<compile_context>
chip_gen: v7x
topology: tpu7x:2x2x1
jax: 0.10.0
libtpu: 0.0.40
codegen_flags: <defaults>
</compile_context>

<pallas_src>
import functools
import math

import jax
import jax.numpy as jnp
from jax import lax
from jax.experimental import pallas as pl
from jax.experimental.pallas import tpu as pltpu


_CONTRACT_LAST = (((1,), (1,)), ((), ()))   # contract last dim of both operands (x @ W.T)


# ------------------------------ fused kernel -------------------------------

def _mha_fused_kernel(q_ref, k_ref, v_ref,
                      wq_ref, wk_ref, wv_ref, wo_ref,
                      bq_ref, bk_ref, bv_ref, bo_ref,
                      o_ref,
                      qp_ref, kp_ref, vp_ref, cat_ref,
                      *, num_heads, head_dim):
    """Grid = (batch, q_tiles).

    q_ref            : (TQ, D)  query tile for this (batch, q-tile) step
    k_ref / v_ref    : (S,  D)  full key/value sequence for this batch element
    wq/wk/wv/wo_ref  : (D,  D)  bf16 weights, torch (out, in) layout
                                (wq pre-scaled by 1/sqrt(head_dim))
    bq/bk/bv/bo_ref  : (1,  D)  f32 biases (bq pre-scaled)
    o_ref            : (TQ, D)  f32 output tile (lane-dense in d_model)
    qp_ref/cat_ref   : (TQ, D)  bf16 VMEM scratch
    kp_ref/vp_ref    : (S,  D)  bf16 VMEM scratch (cached across q tiles)
    """
    hd = head_dim

    # K/V projections depend only on the batch index; the q-tile axis is the
    # innermost ("arbitrary") grid axis, so compute them once per batch element
    # and reuse the VMEM scratch for every q tile of that batch.
    @pl.when(pl.program_id(1) == 0)
    def _():
        x_k = k_ref[...].astype(jnp.bfloat16)
        x_v = v_ref[...].astype(jnp.bfloat16)
        kp = lax.dot_general(x_k, wk_ref[...], _CONTRACT_LAST,
                             preferred_element_type=jnp.float32) + bk_ref[...]
        vp = lax.dot_general(x_v, wv_ref[...], _CONTRACT_LAST,
                             preferred_element_type=jnp.float32) + bv_ref[...]
        kp_ref[...] = kp.astype(jnp.bfloat16)
        vp_ref[...] = vp.astype(jnp.bfloat16)

    # Full-width, lane-dense Q projection (scale already folded into wq/bq).
    x_q = q_ref[...].astype(jnp.bfloat16)
    qp = lax.dot_general(x_q, wq_ref[...], _CONTRACT_LAST,
                         preferred_element_type=jnp.float32) + bq_ref[...]
    qp_ref[...] = qp.astype(jnp.bfloat16)

    # Heads unrolled at trace time; per-head operands are static lane windows of
    # the projection scratch (128-aligned at production head_dim).
    for h in range(num_heads):
        sl = slice(h * hd, (h + 1) * hd)
        q_h = qp_ref[:, sl]                       # (TQ, hd) bf16
        k_h = kp_ref[:, sl]                       # (S,  hd) bf16
        v_h = vp_ref[:, sl]                       # (S,  hd) bf16

        # Scores: contract head_dim directly (no k.T materialization).
        s = lax.dot_general(q_h, k_h, _CONTRACT_LAST,
                            preferred_element_type=jnp.float32)         # (TQ, S)
        m = jnp.max(s, axis=-1, keepdims=True)
        p = jnp.exp(s - m)                                              # f32 exp
        # approx reciprocal -> EUP slot (otherwise idle); ~1e-3 rel. error,
        # acceptable for a forward pass.
        p = p * pl.reciprocal(jnp.sum(p, axis=-1, keepdims=True), approx=True)

        o_h = jnp.dot(p.astype(jnp.bfloat16), v_h,
                      preferred_element_type=jnp.float32)               # (TQ, hd)
        # Head-major concat directly in VMEM: no transpose / concatenate op.
        cat_ref[:, sl] = o_h.astype(jnp.bfloat16)

    # Single output projection: concat(heads) @ wo.T + bo.
    out = lax.dot_general(cat_ref[...], wo_ref[...], _CONTRACT_LAST,
                          preferred_element_type=jnp.float32) + bo_ref[...]
    o_ref[...] = out.astype(o_ref.dtype)


# ------------------------------ module forward -----------------------------

def multi_head_attention(q, k, v, params, num_heads):
    B, S, D = q.shape
    H = num_heads
    hd = D // H
    scale = 1.0 / math.sqrt(hd)

    # Host-side weight prep: bf16 MXU operands, torch (out, in) layout kept so
    # every in-kernel matmul is a last-dim contraction; scale folded into wq/bq.
    wq = (params["wq_w"] * scale).astype(jnp.bfloat16)
    wk = params["wk_w"].astype(jnp.bfloat16)
    wv = params["wv_w"].astype(jnp.bfloat16)
    wo = params["wo_w"].astype(jnp.bfloat16)
    bq = (params["wq_b"] * scale).reshape(1, D).astype(jnp.float32)
    bk = params["wk_b"].reshape(1, D).astype(jnp.float32)
    bv = params["wv_b"].reshape(1, D).astype(jnp.float32)
    bo = params["wo_b"].reshape(1, D).astype(jnp.float32)

    # Query-tile size: full S when short, else 128-row (8-sublane aligned) tiles.
    TQ = S if S <= 128 else 128
    n_qt = pl.cdiv(S, TQ)

    cost = pl.CostEstimate(
        flops=8 * B * S * D * D + 4 * B * S * S * D,
        transcendentals=B * H * S * S,
        bytes_accessed=4 * B * S * D * 4 + 4 * D * D * 2 + 4 * D * 4,
    )

    kernel = functools.partial(_mha_fused_kernel, num_heads=H, head_dim=hd)

    def build(single_buffer_weights):
        # Grid-invariant weights/biases: single-buffer them (they are never
        # re-fetched, double-buffering only burns VMEM — matters at real d_model).
        w_kw = ({"pipeline_mode": pl.Buffered(1)} if single_buffer_weights else {})
        q_spec = pl.BlockSpec((None, TQ, D), lambda b, t: (b, t, 0))
        kv_spec = pl.BlockSpec((None, S, D), lambda b, t: (b, 0, 0))
        w_spec = pl.BlockSpec((D, D), lambda b, t: (0, 0), **w_kw)
        b_spec = pl.BlockSpec((1, D), lambda b, t: (0, 0), **w_kw)
        return pl.pallas_call(
            kernel,
            out_shape=jax.ShapeDtypeStruct((B, S, D), jnp.float32),
            grid=(B, n_qt),
            in_specs=[q_spec, kv_spec, kv_spec,
                      w_spec, w_spec, w_spec, w_spec,
                      b_spec, b_spec, b_spec, b_spec],
            out_specs=pl.BlockSpec((None, TQ, D), lambda b, t: (b, t, 0)),
            scratch_shapes=[
                pltpu.VMEM((TQ, D), jnp.bfloat16),   # q projection
                pltpu.VMEM((S, D), jnp.bfloat16),    # k projection (per-batch cache)
                pltpu.VMEM((S, D), jnp.bfloat16),    # v projection (per-batch cache)
                pltpu.VMEM((TQ, D), jnp.bfloat16),   # head-major concat of o_h
            ],
            compiler_params=pltpu.CompilerParams(
                # Batch axis feeds both TensorCores on v7x; the q-tile axis stays
                # "arbitrary" because the K/V projection cache is primed at tile 0.
                dimension_semantics=("parallel", "arbitrary"),
                # Above v5e's 16 MiB scoped default, within v7x's 64 MiB physical.
                vmem_limit_bytes=48 * 1024 * 1024,
            ),
            cost_estimate=cost,
        )

    args = (q, k, v, wq, wk, wv, wo, bq, bk, bv, bo)
    try:
        return build(single_buffer_weights=True)(*args)
    except Exception:
        # TODO(synk): pl.Buffered(1) rejected on this jax build; default buffering.
        return build(single_buffer_weights=False)(*args)


# -------------------------------- reference --------------------------------

def multi_head_attention_ref(q, k, v, params, num_heads):
    B, S, d_model = q.shape
    hd = d_model // num_heads

    def lin(x, w, b):
        return x @ w.T + b

    def split(x):
        return x.reshape(B, S, num_heads, hd).transpose(0, 2, 1, 3)

    Q = split(lin(q, params["wq_w"], params["wq_b"]))
    K = split(lin(k, params["wk_w"], params["wk_b"]))
    V = split(lin(v, params["wv_w"], params["wv_b"]))
    s = jnp.einsum("bhqd,bhkd->bhqk", Q, K) / math.sqrt(hd)
    p = jax.nn.softmax(s, axis=-1)
    o = jnp.einsum("bhqk,bhkd->bhqd", p, V)
    o = o.transpose(0, 2, 1, 3).reshape(B, S, d_model)
    return lin(o, params["wo_w"], params["wo_b"])


# ---------------------------------- main ------------------------------------

if __name__ == "__main__":
    B, S, d_model, num_heads = 2, 8, 32, 4

    key = jax.random.PRNGKey(0)
    ks = jax.random.split(key, 11)

    def init_linear(kw, kb, n_out, n_in):
        bound = 1.0 / math.sqrt(n_in)
        w = jax.random.uniform(kw, (n_out, n_in), jnp.float32, -bound, bound)
        b = jax.random.uniform(kb, (n_out,), jnp.float32, -bound, bound)
        return w, b

    params = {}
    params["wq_w"], params["wq_b"] = init_linear(ks[0], ks[1], d_model, d_model)
    params["wk_w"], params["wk_b"] = init_linear(ks[2], ks[3], d_model, d_model)
    params["wv_w"], params["wv_b"] = init_linear(ks[4], ks[5], d_model, d_model)
    params["wo_w"], params["wo_b"] = init_linear(ks[6], ks[7], d_model, d_model)

    q = jax.random.normal(ks[8], (B, S, d_model), jnp.float32)
    k = jax.random.normal(ks[9], (B, S, d_model), jnp.float32)
    v = jax.random.normal(ks[10], (B, S, d_model), jnp.float32)

    out = multi_head_attention(q, k, v, params, num_heads)
    out = jax.block_until_ready(out)

    ref = multi_head_attention_ref(q, k, v, params, num_heads)
    assert out.shape == (B, S, d_model)
    # Tolerance accounts for bf16 MXU operands (f32 reference) and the EUP
    # approximate reciprocal in the softmax denominator.
    assert jnp.allclose(out, ref, atol=3e-2, rtol=3e-2), "mismatch vs JAX reference"

    print("KERNEL_OK")
</pallas_src>

<mosaic_0001>
module attributes {stable_mosaic.version = 11 : i64} {
  func.func @_mha_fused_kernel(%arg0: i32, %arg1: i32, %arg2: memref<1x8x32xf32, #tpu.memory_space<vmem>>, %arg3: memref<1x8x32xf32, #tpu.memory_space<vmem>>, %arg4: memref<1x8x32xf32, #tpu.memory_space<vmem>>, %arg5: memref<32x32xbf16, #tpu.memory_space<vmem>>, %arg6: memref<32x32xbf16, #tpu.memory_space<vmem>>, %arg7: memref<32x32xbf16, #tpu.memory_space<vmem>>, %arg8: memref<32x32xbf16, #tpu.memory_space<vmem>>, %arg9: memref<1x32xf32, #tpu.memory_space<vmem>>, %arg10: memref<1x32xf32, #tpu.memory_space<vmem>>, %arg11: memref<1x32xf32, #tpu.memory_space<vmem>>, %arg12: memref<1x32xf32, #tpu.memory_space<vmem>>, %arg13: memref<1x8x32xf32, #tpu.memory_space<vmem>>, %arg14: memref<8x32xbf16, #tpu.memory_space<vmem>>, %arg15: memref<8x32xbf16, #tpu.memory_space<vmem>>, %arg16: memref<8x32xbf16, #tpu.memory_space<vmem>>, %arg17: memref<8x32xbf16, #tpu.memory_space<vmem>>) attributes {dimension_semantics = [#tpu.dimension_semantics<parallel>, #tpu.dimension_semantics<arbitrary>], iteration_bounds = array<i64: 2, 1>, scalar_prefetch = 0 : i64, scratch_operands = 4 : i64, tpu.core_type = #tpu.core_type<tc>, window_params = [{transform_indices = @transform_0, window_bounds = array<i64: 1, 8, 32>}, {transform_indices = @transform_1, window_bounds = array<i64: 1, 8, 32>}, {transform_indices = @transform_2, window_bounds = array<i64: 1, 8, 32>}, {pipeline_mode = #tpu.pipeline_mode<synchronous>, transform_indices = @transform_3, window_bounds = array<i64: 32, 32>}, {pipeline_mode = #tpu.pipeline_mode<synchronous>, transform_indices = @transform_4, window_bounds = array<i64: 32, 32>}, {pipeline_mode = #tpu.pipeline_mode<synchronous>, transform_indices = @transform_5, window_bounds = array<i64: 32, 32>}, {pipeline_mode = #tpu.pipeline_mode<synchronous>, transform_indices = @transform_6, window_bounds = array<i64: 32, 32>}, {pipeline_mode = #tpu.pipeline_mode<synchronous>, transform_indices = @transform_7, window_bounds = array<i64: 1, 32>}, {pipeline_mode = #tpu.pipeline_mode<synchronous>, transform_indices = @transform_8, window_bounds = array<i64: 1, 32>}, {pipeline_mode = #tpu.pipeline_mode<synchronous>, transform_indices = @transform_9, window_bounds = array<i64: 1, 32>}, {pipeline_mode = #tpu.pipeline_mode<synchronous>, transform_indices = @transform_10, window_bounds = array<i64: 1, 32>}, {transform_indices = @transform_11, window_bounds = array<i64: 1, 8, 32>}]} {
    %c0_i32 = arith.constant 0 : i32
    %0 = arith.cmpi eq, %arg1, %c0_i32 : i32
    %1 = arith.extui %0 : i1 to i32
    %c0_i32_0 = arith.constant 0 : i32
    %2 = arith.cmpi ne, %1, %c0_i32_0 : i32
    scf.if %2 {
      %c0_64 = arith.constant 0 : index
      %c0_65 = arith.constant 0 : index
      %c0_66 = arith.constant 0 : index
      %94 = vector.load %arg3[%c0_64, %c0_65, %c0_66] : memref<1x8x32xf32, #tpu.memory_space<vmem>>, vector<1x8x32xf32>
      %95 = vector.shape_cast %94 : vector<1x8x32xf32> to vector<8x32xf32>
      %96 = arith.truncf %95 : vector<8x32xf32> to vector<8x32xbf16>
      %c0_67 = arith.constant 0 : index
      %c0_68 = arith.constant 0 : index
      %c0_69 = arith.constant 0 : index
      %97 = vector.load %arg4[%c0_67, %c0_68, %c0_69] : memref<1x8x32xf32, #tpu.memory_space<vmem>>, vector<1x8x32xf32>
      %98 = vector.shape_cast %97 : vector<1x8x32xf32> to vector<8x32xf32>
      %99 = arith.truncf %98 : vector<8x32xf32> to vector<8x32xbf16>
      %c0_70 = arith.constant 0 : index
      %c0_71 = arith.constant 0 : index
      %100 = vector.load %arg6[%c0_70, %c0_71] : memref<32x32xbf16, #tpu.memory_space<vmem>>, vector<32x32xbf16>
      %cst_72 = arith.constant dense<0.000000e+00> : vector<8x32xf32>
      %101 = tpu.matmul %96, %100, %cst_72 {dimension_numbers = #tpu.dot_dimension_numbers<[1], [1], [0], [0], [0, 0, 1, 0], [], []>} : vector<8x32xbf16>, vector<32x32xbf16>, vector<8x32xf32> -> vector<8x32xf32>
      %c0_73 = arith.constant 0 : index
      %c0_74 = arith.constant 0 : index
      %102 = vector.load %arg10[%c0_73, %c0_74] : memref<1x32xf32, #tpu.memory_space<vmem>>, vector<1x32xf32>
      %103 = vector.broadcast %102 : vector<1x32xf32> to vector<8x32xf32>
      %104 = arith.addf %101, %103 : vector<8x32xf32>
      %c0_75 = arith.constant 0 : index
      %c0_76 = arith.constant 0 : index
      %105 = vector.load %arg7[%c0_75, %c0_76] : memref<32x32xbf16, #tpu.memory_space<vmem>>, vector<32x32xbf16>
      %cst_77 = arith.constant dense<0.000000e+00> : vector<8x32xf32>
      %106 = tpu.matmul %99, %105, %cst_77 {dimension_numbers = #tpu.dot_dimension_numbers<[1], [1], [0], [0], [0, 0, 1, 0], [], []>} : vector<8x32xbf16>, vector<32x32xbf16>, vector<8x32xf32> -> vector<8x32xf32>
      %c0_78 = arith.constant 0 : index
      %c0_79 = arith.constant 0 : index
      %107 = vector.load %arg11[%c0_78, %c0_79] : memref<1x32xf32, #tpu.memory_space<vmem>>, vector<1x32xf32>
      %108 = vector.broadcast %107 : vector<1x32xf32> to vector<8x32xf32>
      %109 = arith.addf %106, %108 : vector<8x32xf32>
      %110 = arith.truncf %104 : vector<8x32xf32> to vector<8x32xbf16>
      %c0_80 = arith.constant 0 : index
      %c0_81 = arith.constant 0 : index
      %111 = vector.load %arg15[%c0_80, %c0_81] : memref<8x32xbf16, #tpu.memory_space<vmem>>, vector<8x32xbf16>
      tpu.vector_store %arg15[%c0_80, %c0_81], %110 {strides = array<i32>} : memref<8x32xbf16, #tpu.memory_space<vmem>>, vector<8x32xbf16>,
      %112 = arith.truncf %109 : vector<8x32xf32> to vector<8x32xbf16>
      %c0_82 = arith.constant 0 : index
      %c0_83 = arith.constant 0 : index
      %113 = vector.load %arg16[%c0_82, %c0_83] : memref<8x32xbf16, #tpu.memory_space<vmem>>, vector<8x32xbf16>
      tpu.vector_store %arg16[%c0_82, %c0_83], %112 {strides = array<i32>} : memref<8x32xbf16, #tpu.memory_space<vmem>>, vector<8x32xbf16>,
    } else {
    }
    %c0 = arith.constant 0 : index
    %c0_1 = arith.constant 0 : index
    %c0_2 = arith.constant 0 : index
    %3 = vector.load %arg2[%c0, %c0_1, %c0_2] : memref<1x8x32xf32, #tpu.memory_space<vmem>>, vector<1x8x32xf32>
    %4 = vector.shape_cast %3 : vector<1x8x32xf32> to vector<8x32xf32>
    %5 = arith.truncf %4 : vector<8x32xf32> to vector<8x32xbf16>
    %c0_3 = arith.constant 0 : index
    %c0_4 = arith.constant 0 : index
    %6 = vector.load %arg5[%c0_3, %c0_4] : memref<32x32xbf16, #tpu.memory_space<vmem>>, vector<32x32xbf16>
    %cst = arith.constant dense<0.000000e+00> : vector<8x32xf32>
    %7 = tpu.matmul %5, %6, %cst {dimension_numbers = #tpu.dot_dimension_numbers<[1], [1], [0], [0], [0, 0, 1, 0], [], []>} : vector<8x32xbf16>, vector<32x32xbf16>, vector<8x32xf32> -> vector<8x32xf32>
    %c0_5 = arith.constant 0 : index
    %c0_6 = arith.constant 0 : index
    %8 = vector.load %arg9[%c0_5, %c0_6] : memref<1x32xf32, #tpu.memory_space<vmem>>, vector<1x32xf32>
    %9 = vector.broadcast %8 : vector<1x32xf32> to vector<8x32xf32>
    %10 = arith.addf %7, %9 : vector<8x32xf32>
    %11 = arith.truncf %10 : vector<8x32xf32> to vector<8x32xbf16>
    %c0_7 = arith.constant 0 : index
    %c0_8 = arith.constant 0 : index
    %12 = vector.load %arg14[%c0_7, %c0_8] : memref<8x32xbf16, #tpu.memory_space<vmem>>, vector<8x32xbf16>
    tpu.vector_store %arg14[%c0_7, %c0_8], %11 {strides = array<i32>} : memref<8x32xbf16, #tpu.memory_space<vmem>>, vector<8x32xbf16>,
    %c0_9 = arith.constant 0 : index
    %c0_10 = arith.constant 0 : index
    %13 = vector.load %arg14[%c0_9, %c0_10] : memref<8x32xbf16, #tpu.memory_space<vmem>>, vector<8x8xbf16>
    %c0_11 = arith.constant 0 : index
    %c0_12 = arith.constant 0 : index
    %14 = vector.load %arg15[%c0_11, %c0_12] : memref<8x32xbf16, #tpu.memory_space<vmem>>, vector<8x8xbf16>
    %c0_13 = arith.constant 0 : index
    %c0_14 = arith.constant 0 : index
    %15 = vector.load %arg16[%c0_13, %c0_14] : memref<8x32xbf16, #tpu.memory_space<vmem>>, vector<8x8xbf16>
    %cst_15 = arith.constant dense<0.000000e+00> : vector<8x8xf32>
    %16 = tpu.matmul %13, %14, %cst_15 {dimension_numbers = #tpu.dot_dimension_numbers<[1], [1], [0], [0], [0, 0, 1, 0], [], []>} : vector<8x8xbf16>, vector<8x8xbf16>, vector<8x8xf32> -> vector<8x8xf32>
    %cst_16 = arith.constant dense<0xFF800000> : vector<8xf32>
    %17 = vector.multi_reduction <maximumf>, %16, %cst_16 [1] : vector<8x8xf32> to vector<8xf32>
    %18 = vector.shape_cast %17 : vector<8xf32> to vector<8x1xf32>
    %19 = vector.broadcast %18 : vector<8x1xf32> to vector<8x8xf32>
    %20 = arith.subf %16, %19 : vector<8x8xf32>
    %21 = math.exp %20 : vector<8x8xf32>
    %cst_17 = arith.constant dense<0.000000e+00> : vector<8xf32>
    %22 = vector.multi_reduction <add>, %21, %cst_17 [1] : vector<8x8xf32> to vector<8xf32>
    %23 = vector.shape_cast %22 : vector<8xf32> to vector<8x1xf32>
    %24 = tpu.reciprocal %23 {approx = true} : vector<8x1xf32> -> vector<8x1xf32>
    %25 = vector.broadcast %24 : vector<8x1xf32> to vector<8x8xf32>
    %26 = arith.mulf %21, %25 : vector<8x8xf32>
    %27 = arith.truncf %26 : vector<8x8xf32> to vector<8x8xbf16>
    %cst_18 = arith.constant dense<0.000000e+00> : vector<8x8xf32>
    %28 = tpu.matmul %27, %15, %cst_18 {dimension_numbers = #tpu.dot_dimension_numbers<[1], [0], [0], [1], [0, 0, 1, 1], [], []>} : vector<8x8xbf16>, vector<8x8xbf16>, vector<8x8xf32> -> vector<8x8xf32>
    %29 = arith.truncf %28 : vector<8x8xf32> to vector<8x8xbf16>
    %c0_19 = arith.constant 0 : index
    %c0_20 = arith.constant 0 : index
    %30 = vector.load %arg17[%c0_19, %c0_20] : memref<8x32xbf16, #tpu.memory_space<vmem>>, vector<8x8xbf16>
    tpu.vector_store %arg17[%c0_19, %c0_20], %29 {strides = array<i32>} : memref<8x32xbf16, #tpu.memory_space<vmem>>, vector<8x8xbf16>,
    %c0_21 = arith.constant 0 : index
    %c8 = arith.constant 8 : index
    %31 = vector.load %arg14[%c0_21, %c8] : memref<8x32xbf16, #tpu.memory_space<vmem>>, vector<8x8xbf16>
    %c0_22 = arith.constant 0 : index
    %c8_23 = arith.constant 8 : index
    %32 = vector.load %arg15[%c0_22, %c8_23] : memref<8x32xbf16, #tpu.memory_space<vmem>>, vector<8x8xbf16>
    %c0_24 = arith.constant 0 : index
    %c8_25 = arith.constant 8 : index
    %33 = vector.load %arg16[%c0_24, %c8_25] : memref<8x32xbf16, #tpu.memory_space<vmem>>, vector<8x8xbf16>
    %cst_26 = arith.constant dense<0.000000e+00> : vector<8x8xf32>
    %34 = tpu.matmul %31, %32, %cst_26 {dimension_numbers = #tpu.dot_dimension_numbers<[1], [1], [0], [0], [0, 0, 1, 0], [], []>} : vector<8x8xbf16>, vector<8x8xbf16>, vector<8x8xf32> -> vector<8x8xf32>
    %cst_27 = arith.constant dense<0xFF800000> : vector<8xf32>
    %35 = vector.multi_reduction <maximumf>, %34, %cst_27 [1] : vector<8x8xf32> to vector<8xf32>
    %36 = vector.shape_cast %35 : vector<8xf32> to vector<8x1xf32>
    %37 = vector.broadcast %36 : vector<8x1xf32> to vector<8x8xf32>
    %38 = arith.subf %34, %37 : vector<8x8xf32>
    %39 = math.exp %38 : vector<8x8xf32>
    %cst_28 = arith.constant dense<0.000000e+00> : vector<8xf32>
    %40 = vector.multi_reduction <add>, %39, %cst_28 [1] : vector<8x8xf32> to vector<8xf32>
    %41 = vector.shape_cast %40 : vector<8xf32> to vector<8x1xf32>
    %42 = tpu.reciprocal %41 {approx = true} : vector<8x1xf32> -> vector<8x1xf32>
    %43 = vector.broadcast %42 : vector<8x1xf32> to vector<8x8xf32>
    %44 = arith.mulf %39, %43 : vector<8x8xf32>
    %45 = arith.truncf %44 : vector<8x8xf32> to vector<8x8xbf16>
    %cst_29 = arith.constant dense<0.000000e+00> : vector<8x8xf32>
    %46 = tpu.matmul %45, %33, %cst_29 {dimension_numbers = #tpu.dot_dimension_numbers<[1], [0], [0], [1], [0, 0, 1, 1], [], []>} : vector<8x8xbf16>, vector<8x8xbf16>, vector<8x8xf32> -> vector<8x8xf32>
    %47 = arith.truncf %46 : vector<8x8xf32> to vector<8x8xbf16>
    %c0_30 = arith.constant 0 : index
    %c8_31 = arith.constant 8 : index
    %48 = vector.load %arg17[%c0_30, %c8_31] : memref<8x32xbf16, #tpu.memory_space<vmem>>, vector<8x8xbf16>
    tpu.vector_store %arg17[%c0_30, %c8_31], %47 {strides = array<i32>} : memref<8x32xbf16, #tpu.memory_space<vmem>>, vector<8x8xbf16>,
    %c0_32 = arith.constant 0 : index
    %c16 = arith.constant 16 : index
    %49 = vector.load %arg14[%c0_32, %c16] : memref<8x32xbf16, #tpu.memory_space<vmem>>, vector<8x8xbf16>
    %c0_33 = arith.constant 0 : index
    %c16_34 = arith.constant 16 : index
    %50 = vector.load %arg15[%c0_33, %c16_34] : memref<8x32xbf16, #tpu.memory_space<vmem>>, vector<8x8xbf16>
    %c0_35 = arith.constant 0 : index
    %c16_36 = arith.constant 16 : index
    %51 = vector.load %arg16[%c0_35, %c16_36] : memref<8x32xbf16, #tpu.memory_space<vmem>>, vector<8x8xbf16>
    %cst_37 = arith.constant dense<0.000000e+00> : vector<8x8xf32>
    %52 = tpu.matmul %49, %50, %cst_37 {dimension_numbers = #tpu.dot_dimension_numbers<[1], [1], [0], [0], [0, 0, 1, 0], [], []>} : vector<8x8xbf16>, vector<8x8xbf16>, vector<8x8xf32> -> vector<8x8xf32>
    %cst_38 = arith.constant dense<0xFF800000> : vector<8xf32>
    %53 = vector.multi_reduction <maximumf>, %52, %cst_38 [1] : vector<8x8xf32> to vector<8xf32>
    %54 = vector.shape_cast %53 : vector<8xf32> to vector<8x1xf32>
    %55 = vector.broadcast %54 : vector<8x1xf32> to vector<8x8xf32>
    %56 = arith.subf %52, %55 : vector<8x8xf32>
    %57 = math.exp %56 : vector<8x8xf32>
    %cst_39 = arith.constant dense<0.000000e+00> : vector<8xf32>
    %58 = vector.multi_reduction <add>, %57, %cst_39 [1] : vector<8x8xf32> to vector<8xf32>
    %59 = vector.shape_cast %58 : vector<8xf32> to vector<8x1xf32>
    %60 = tpu.reciprocal %59 {approx = true} : vector<8x1xf32> -> vector<8x1xf32>
    %61 = vector.broadcast %60 : vector<8x1xf32> to vector<8x8xf32>
    %62 = arith.mulf %57, %61 : vector<8x8xf32>
    %63 = arith.truncf %62 : vector<8x8xf32> to vector<8x8xbf16>
    %cst_40 = arith.constant dense<0.000000e+00> : vector<8x8xf32>
    %64 = tpu.matmul %63, %51, %cst_40 {dimension_numbers = #tpu.dot_dimension_numbers<[1], [0], [0], [1], [0, 0, 1, 1], [], []>} : vector<8x8xbf16>, vector<8x8xbf16>, vector<8x8xf32> -> vector<8x8xf32>
    %65 = arith.truncf %64 : vector<8x8xf32> to vector<8x8xbf16>
    %c0_41 = arith.constant 0 : index
    %c16_42 = arith.constant 16 : index
    %66 = vector.load %arg17[%c0_41, %c16_42] : memref<8x32xbf16, #tpu.memory_space<vmem>>, vector<8x8xbf16>
    tpu.vector_store %arg17[%c0_41, %c16_42], %65 {strides = array<i32>} : memref<8x32xbf16, #tpu.memory_space<vmem>>, vector<8x8xbf16>,
    %c0_43 = arith.constant 0 : index
    %c24 = arith.constant 24 : index
    %67 = vector.load %arg14[%c0_43, %c24] : memref<8x32xbf16, #tpu.memory_space<vmem>>, vector<8x8xbf16>
    %c0_44 = arith.constant 0 : index
    %c24_45 = arith.constant 24 : index
    %68 = vector.load %arg15[%c0_44, %c24_45] : memref<8x32xbf16, #tpu.memory_space<vmem>>, vector<8x8xbf16>
    %c0_46 = arith.constant 0 : index
    %c24_47 = arith.constant 24 : index
    %69 = vector.load %arg16[%c0_46, %c24_47] : memref<8x32xbf16, #tpu.memory_space<vmem>>, vector<8x8xbf16>
    %cst_48 = arith.constant dense<0.000000e+00> : vector<8x8xf32>
    %70 = tpu.matmul %67, %68, %cst_48 {dimension_numbers = #tpu.dot_dimension_numbers<[1], [1], [0], [0], [0, 0, 1, 0], [], []>} : vector<8x8xbf16>, vector<8x8xbf16>, vector<8x8xf32> -> vector<8x8xf32>
    %cst_49 = arith.constant dense<0xFF800000> : vector<8xf32>
    %71 = vector.multi_reduction <maximumf>, %70, %cst_49 [1] : vector<8x8xf32> to vector<8xf32>
    %72 = vector.shape_cast %71 : vector<8xf32> to vector<8x1xf32>
    %73 = vector.broadcast %72 : vector<8x1xf32> to vector<8x8xf32>
    %74 = arith.subf %70, %73 : vector<8x8xf32>
    %75 = math.exp %74 : vector<8x8xf32>
    %cst_50 = arith.constant dense<0.000000e+00> : vector<8xf32>
    %76 = vector.multi_reduction <add>, %75, %cst_50 [1] : vector<8x8xf32> to vector<8xf32>
    %77 = vector.shape_cast %76 : vector<8xf32> to vector<8x1xf32>
    %78 = tpu.reciprocal %77 {approx = true} : vector<8x1xf32> -> vector<8x1xf32>
    %79 = vector.broadcast %78 : vector<8x1xf32> to vector<8x8xf32>
    %80 = arith.mulf %75, %79 : vector<8x8xf32>
    %81 = arith.truncf %80 : vector<8x8xf32> to vector<8x8xbf16>
    %cst_51 = arith.constant dense<0.000000e+00> : vector<8x8xf32>
    %82 = tpu.matmul %81, %69, %cst_51 {dimension_numbers = #tpu.dot_dimension_numbers<[1], [0], [0], [1], [0, 0, 1, 1], [], []>} : vector<8x8xbf16>, vector<8x8xbf16>, vector<8x8xf32> -> vector<8x8xf32>
    %83 = arith.truncf %82 : vector<8x8xf32> to vector<8x8xbf16>
    %c0_52 = arith.constant 0 : index
    %c24_53 = arith.constant 24 : index
    %84 = vector.load %arg17[%c0_52, %c24_53] : memref<8x32xbf16, #tpu.memory_space<vmem>>, vector<8x8xbf16>
    tpu.vector_store %arg17[%c0_52, %c24_53], %83 {strides = array<i32>} : memref<8x32xbf16, #tpu.memory_space<vmem>>, vector<8x8xbf16>,
    %c0_54 = arith.constant 0 : index
    %c0_55 = arith.constant 0 : index
    %85 = vector.load %arg17[%c0_54, %c0_55] : memref<8x32xbf16, #tpu.memory_space<vmem>>, vector<8x32xbf16>
    %c0_56 = arith.constant 0 : index
    %c0_57 = arith.constant 0 : index
    %86 = vector.load %arg8[%c0_56, %c0_57] : memref<32x32xbf16, #tpu.memory_space<vmem>>, vector<32x32xbf16>
    %cst_58 = arith.constant dense<0.000000e+00> : vector<8x32xf32>
    %87 = tpu.matmul %85, %86, %cst_58 {dimension_numbers = #tpu.dot_dimension_numbers<[1], [1], [0], [0], [0, 0, 1, 0], [], []>} : vector<8x32xbf16>, vector<32x32xbf16>, vector<8x32xf32> -> vector<8x32xf32>
    %c0_59 = arith.constant 0 : index
    %c0_60 = arith.constant 0 : index
    %88 = vector.load %arg12[%c0_59, %c0_60] : memref<1x32xf32, #tpu.memory_space<vmem>>, vector<1x32xf32>
    %89 = vector.broadcast %88 : vector<1x32xf32> to vector<8x32xf32>
    %90 = arith.addf %87, %89 : vector<8x32xf32>
    %c0_61 = arith.constant 0 : index
    %c0_62 = arith.constant 0 : index
    %c0_63 = arith.constant 0 : index
    %91 = vector.load %arg13[%c0_61, %c0_62, %c0_63] : memref<1x8x32xf32, #tpu.memory_space<vmem>>, vector<1x8x32xf32>
    %92 = vector.shape_cast %91 : vector<1x8x32xf32> to vector<8x32xf32>
    %93 = vector.shape_cast %90 : vector<8x32xf32> to vector<1x8x32xf32>
    tpu.vector_store %arg13[%c0_61, %c0_62, %c0_63], %93 {strides = array<i32>} : memref<1x8x32xf32, #tpu.memory_space<vmem>>, vector<1x8x32xf32>,
    return
  }
  func.func @transform_0(%arg0: i32, %arg1: i32) -> (i32, i32, i32) {
    %c0_i32 = arith.constant 0 : i32
    %c0_i32_0 = arith.constant 0 : i32
    return %arg0, %arg1, %c0_i32 : i32, i32, i32
  }
  func.func @transform_1(%arg0: i32, %arg1: i32) -> (i32, i32, i32) {
    %c0_i32 = arith.constant 0 : i32
    %c0_i32_0 = arith.constant 0 : i32
    %c0_i32_1 = arith.constant 0 : i32
    return %arg0, %c0_i32, %c0_i32_0 : i32, i32, i32
  }
  func.func @transform_2(%arg0: i32, %arg1: i32) -> (i32, i32, i32) {
    %c0_i32 = arith.constant 0 : i32
    %c0_i32_0 = arith.constant 0 : i32
    %c0_i32_1 = arith.constant 0 : i32
    return %arg0, %c0_i32, %c0_i32_0 : i32, i32, i32
  }
  func.func @transform_3(%arg0: i32, %arg1: i32) -> (i32, i32) {
    %c0_i32 = arith.constant 0 : i32
    %c0_i32_0 = arith.constant 0 : i32
    %c0_i32_1 = arith.constant 0 : i32
    return %c0_i32, %c0_i32_0 : i32, i32
  }
  func.func @transform_4(%arg0: i32, %arg1: i32) -> (i32, i32) {
    %c0_i32 = arith.constant 0 : i32
    %c0_i32_0 = arith.constant 0 : i32
    %c0_i32_1 = arith.constant 0 : i32
    return %c0_i32, %c0_i32_0 : i32, i32
  }
  func.func @transform_5(%arg0: i32, %arg1: i32) -> (i32, i32) {
    %c0_i32 = arith.constant 0 : i32
    %c0_i32_0 = arith.constant 0 : i32
    %c0_i32_1 = arith.constant 0 : i32
    return %c0_i32, %c0_i32_0 : i32, i32
  }
  func.func @transform_6(%arg0: i32, %arg1: i32) -> (i32, i32) {
    %c0_i32 = arith.constant 0 : i32
    %c0_i32_0 = arith.constant 0 : i32
    %c0_i32_1 = arith.constant 0 : i32
    return %c0_i32, %c0_i32_0 : i32, i32
  }
  func.func @transform_7(%arg0: i32, %arg1: i32) -> (i32, i32) {
    %c0_i32 = arith.constant 0 : i32
    %c0_i32_0 = arith.constant 0 : i32
    %c0_i32_1 = arith.constant 0 : i32
    return %c0_i32, %c0_i32_0 : i32, i32
  }
  func.func @transform_8(%arg0: i32, %arg1: i32) -> (i32, i32) {
    %c0_i32 = arith.constant 0 : i32
    %c0_i32_0 = arith.constant 0 : i32
    %c0_i32_1 = arith.constant 0 : i32
    return %c0_i32, %c0_i32_0 : i32, i32
  }
  func.func @transform_9(%arg0: i32, %arg1: i32) -> (i32, i32) {
    %c0_i32 = arith.constant 0 : i32
    %c0_i32_0 = arith.constant 0 : i32
    %c0_i32_1 = arith.constant 0 : i32
    return %c0_i32, %c0_i32_0 : i32, i32
  }
  func.func @transform_10(%arg0: i32, %arg1: i32) -> (i32, i32) {
    %c0_i32 = arith.constant 0 : i32
    %c0_i32_0 = arith.constant 0 : i32
    %c0_i32_1 = arith.constant 0 : i32
    return %c0_i32, %c0_i32_0 : i32, i32
  }
  func.func @transform_11(%arg0: i32, %arg1: i32) -> (i32, i32, i32) {
    %c0_i32 = arith.constant 0 : i32
    %c0_i32_0 = arith.constant 0 : i32
    return %arg0, %arg1, %c0_i32 : i32, i32, i32
  }
}

module attributes {stable_mosaic.version = 11 : i64} {
  func.func @_mha_fused_kernel(%arg0: i32, %arg1: i32, %arg2: memref<1x8x32xf32, #tpu.memory_space<vmem>>, %arg3: memref<1x8x32xf32, #tpu.memory_space<vmem>>, %arg4: memref<1x8x32xf32, #tpu.memory_space<vmem>>, %arg5: memref<32x32xbf16, #tpu.memory_space<vmem>>, %arg6: memref<32x32xbf16, #tpu.memory_space<vmem>>, %arg7: memref<32x32xbf16, #tpu.memory_space<vmem>>, %arg8: memref<32x32xbf16, #tpu.memory_space<vmem>>, %arg9: memref<1x32xf32, #tpu.memory_space<vmem>>, %arg10: memref<1x32xf32, #tpu.memory_space<vmem>>, %arg11: memref<1x32xf32, #tpu.memory_space<vmem>>, %arg12: memref<1x32xf32, #tpu.memory_space<vmem>>, %arg13: memref<1x8x32xf32, #tpu.memory_space<vmem>>, %arg14: memref<8x32xbf16, #tpu.memory_space<vmem>>, %arg15: memref<8x32xbf16, #tpu.memory_space<vmem>>, %arg16: memref<8x32xbf16, #tpu.memory_space<vmem>>, %arg17: memref<8x32xbf16, #tpu.memory_space<vmem>>) attributes {dimension_semantics = [#tpu.dimension_semantics<parallel>, #tpu.dimension_semantics<arbitrary>], iteration_bounds = array<i64: 2, 1>, scalar_prefetch = 0 : i64, scratch_operands = 4 : i64, tpu.core_type = #tpu.core_type<tc>, window_params = [{transform_indices = @transform_0, window_bounds = array<i64: 1, 8, 32>}, {transform_indices = @transform_1, window_bounds = array<i64: 1, 8, 32>}, {transform_indices = @transform_2, window_bounds = array<i64: 1, 8, 32>}, {pipeline_mode = #tpu.pipeline_mode<synchronous>, transform_indices = @transform_3, window_bounds = array<i64: 32, 32>}, {pipeline_mode = #tpu.pipeline_mode<synchronous>, transform_indices = @transform_4, window_bounds = array<i64: 32, 32>}, {pipeline_mode = #tpu.pipeline_mode<synchronous>, transform_indices = @transform_5, window_bounds = array<i64: 32, 32>}, {pipeline_mode = #tpu.pipeline_mode<synchronous>, transform_indices = @transform_6, window_bounds = array<i64: 32, 32>}, {pipeline_mode = #tpu.pipeline_mode<synchronous>, transform_indices = @transform_7, window_bounds = array<i64: 1, 32>}, {pipeline_mode = #tpu.pipeline_mode<synchronous>, transform_indices = @transform_8, window_bounds = array<i64: 1, 32>}, {pipeline_mode = #tpu.pipeline_mode<synchronous>, transform_indices = @transform_9, window_bounds = array<i64: 1, 32>}, {pipeline_mode = #tpu.pipeline_mode<synchronous>, transform_indices = @transform_10, window_bounds = array<i64: 1, 32>}, {transform_indices = @transform_11, window_bounds = array<i64: 1, 8, 32>}]} {
    %c0_i32 = arith.constant 0 : i32
    %0 = arith.cmpi eq, %arg1, %c0_i32 : i32
    %1 = arith.extui %0 : i1 to i32
    %c0_i32_0 = arith.constant 0 : i32
    %2 = arith.cmpi ne, %1, %c0_i32_0 : i32
    scf.if %2 {
      %c0_64 = arith.constant 0 : index
      %c0_65 = arith.constant 0 : index
      %c0_66 = arith.constant 0 : index
      %94 = vector.load %arg3[%c0_64, %c0_65, %c0_66] : memref<1x8x32xf32, #tpu.memory_space<vmem>>, vector<1x8x32xf32>
      %95 = vector.shape_cast %94 : vector<1x8x32xf32> to vector<8x32xf32>
      %96 = arith.truncf %95 : vector<8x32xf32> to vector<8x32xbf16>
      %c0_67 = arith.constant 0 : index
      %c0_68 = arith.constant 0 : index
      %c0_69 = arith.constant 0 : index
      %97 = vector.load %arg4[%c0_67, %c0_68, %c0_69] : memref<1x8x32xf32, #tpu.memory_space<vmem>>, vector<1x8x32xf32>
      %98 = vector.shape_cast %97 : vector<1x8x32xf32> to vector<8x32xf32>
      %99 = arith.truncf %98 : vector<8x32xf32> to vector<8x32xbf16>
      %c0_70 = arith.constant 0 : index
      %c0_71 = arith.constant 0 : index
      %100 = vector.load %arg6[%c0_70, %c0_71] : memref<32x32xbf16, #tpu.memory_space<vmem>>, vector<32x32xbf16>
      %cst_72 = arith.constant dense<0.000000e+00> : vector<8x32xf32>
      %101 = tpu.matmul %96, %100, %cst_72 {dimension_numbers = #tpu.dot_dimension_numbers<[1], [1], [0], [0], [0, 0, 1, 0], [], []>} : vector<8x32xbf16>, vector<32x32xbf16>, vector<8x32xf32> -> vector<8x32xf32>
      %c0_73 = arith.constant 0 : index
      %c0_74 = arith.constant 0 : index
      %102 = vector.load %arg10[%c0_73, %c0_74] : memref<1x32xf32, #tpu.memory_space<vmem>>, vector<1x32xf32>
      %103 = vector.broadcast %102 : vector<1x32xf32> to vector<8x32xf32>
      %104 = arith.addf %101, %103 : vector<8x32xf32>
      %c0_75 = arith.constant 0 : index
      %c0_76 = arith.constant 0 : index
      %105 = vector.load %arg7[%c0_75, %c0_76] : memref<32x32xbf16, #tpu.memory_space<vmem>>, vector<32x32xbf16>
      %cst_77 = arith.constant dense<0.000000e+00> : vector<8x32xf32>
      %106 = tpu.matmul %99, %105, %cst_77 {dimension_numbers = #tpu.dot_dimension_numbers<[1], [1], [0], [0], [0, 0, 1, 0], [], []>} : vector<8x32xbf16>, vector<32x32xbf16>, vector<8x32xf32> -> vector<8x32xf32>
      %c0_78 = arith.constant 0 : index
      %c0_79 = arith.constant 0 : index
      %107 = vector.load %arg11[%c0_78, %c0_79] : memref<1x32xf32, #tpu.memory_space<vmem>>, vector<1x32xf32>
      %108 = vector.broadcast %107 : vector<1x32xf32> to vector<8x32xf32>
      %109 = arith.addf %106, %108 : vector<8x32xf32>
      %110 = arith.truncf %104 : vector<8x32xf32> to vector<8x32xbf16>
      %c0_80 = arith.constant 0 : index
      %c0_81 = arith.constant 0 : index
      %111 = vector.load %arg15[%c0_80, %c0_81] : memref<8x32xbf16, #tpu.memory_space<vmem>>, vector<8x32xbf16>
      tpu.vector_store %arg15[%c0_80, %c0_81], %110 {strides = array<i32>} : memref<8x32xbf16, #tpu.memory_space<vmem>>, vector<8x32xbf16>,
      %112 = arith.truncf %109 : vector<8x32xf32> to vector<8x32xbf16>
      %c0_82 = arith.constant 0 : index
      %c0_83 = arith.constant 0 : index
      %113 = vector.load %arg16[%c0_82, %c0_83] : memref<8x32xbf16, #tpu.memory_space<vmem>>, vector<8x32xbf16>
      tpu.vector_store %arg16[%c0_82, %c0_83], %112 {strides = array<i32>} : memref<8x32xbf16, #tpu.memory_space<vmem>>, vector<8x32xbf16>,
    } else {
    }
    %c0 = arith.constant 0 : index
    %c0_1 = arith.constant 0 : index
    %c0_2 = arith.constant 0 : index
    %3 = vector.load %arg2[%c0, %c0_1, %c0_2] : memref<1x8x32xf32, #tpu.memory_space<vmem>>, vector<1x8x32xf32>
    %4 = vector.shape_cast %3 : vector<1x8x32xf32> to vector<8x32xf32>
    %5 = arith.truncf %4 : vector<8x32xf32> to vector<8x32xbf16>
    %c0_3 = arith.constant 0 : index
    %c0_4 = arith.constant 0 : index
    %6 = vector.load %arg5[%c0_3, %c0_4] : memref<32x32xbf16, #tpu.memory_space<vmem>>, vector<32x32xbf16>
    %cst = arith.constant dense<0.000000e+00> : vector<8x32xf32>
    %7 = tpu.matmul %5, %6, %cst {dimension_numbers = #tpu.dot_dimension_numbers<[1], [1], [0], [0], [0, 0, 1, 0], [], []>} : vector<8x32xbf16>, vector<32x32xbf16>, vector<8x32xf32> -> vector<8x32xf32>
    %c0_5 = arith.constant 0 : index
    %c0_6 = arith.constant 0 : index
    %8 = vector.load %arg9[%c0_5, %c0_6] : memref<1x32xf32, #tpu.memory_space<vmem>>, vector<1x32xf32>
    %9 = vector.broadcast %8 : vector<1x32xf32> to vector<8x32xf32>
    %10 = arith.addf %7, %9 : vector<8x32xf32>
    %11 = arith.truncf %10 : vector<8x32xf32> to vector<8x32xbf16>
    %c0_7 = arith.constant 0 : index
    %c0_8 = arith.constant 0 : index
    %12 = vector.load %arg14[%c0_7, %c0_8] : memref<8x32xbf16, #tpu.memory_space<vmem>>, vector<8x32xbf16>
    tpu.vector_store %arg14[%c0_7, %c0_8], %11 {strides = array<i32>} : memref<8x32xbf16, #tpu.memory_space<vmem>>, vector<8x32xbf16>,
    %c0_9 = arith.constant 0 : index
    %c0_10 = arith.constant 0 : index
    %13 = vector.load %arg14[%c0_9, %c0_10] : memref<8x32xbf16, #tpu.memory_space<vmem>>, vector<8x8xbf16>
    %c0_11 = arith.constant 0 : index
    %c0_12 = arith.constant 0 : index
    %14 = vector.load %arg15[%c0_11, %c0_12] : memref<8x32xbf16, #tpu.memory_space<vmem>>, vector<8x8xbf16>
    %c0_13 = arith.constant 0 : index
    %c0_14 = arith.constant 0 : index
    %15 = vector.load %arg16[%c0_13, %c0_14] : memref<8x32xbf16, #tpu.memory_space<vmem>>, vector<8x8xbf16>
    %cst_15 = arith.constant dense<0.000000e+00> : vector<8x8xf32>
    %16 = tpu.matmul %13, %14, %cst_15 {dimension_numbers = #tpu.dot_dimension_numbers<[1], [1], [0], [0], [0, 0, 1, 0], [], []>} : vector<8x8xbf16>, vector<8x8xbf16>, vector<8x8xf32> -> vector<8x8xf32>
    %cst_16 = arith.constant dense<0xFF800000> : vector<8xf32>
    %17 = vector.multi_reduction <maximumf>, %16, %cst_16 [1] : vector<8x8xf32> to vector<8xf32>
    %18 = vector.shape_cast %17 : vector<8xf32> to vector<8x1xf32>
    %19 = vector.broadcast %18 : vector<8x1xf32> to vector<8x8xf32>
    %20 = arith.subf %16, %19 : vector<8x8xf32>
    %21 = math.exp %20 : vector<8x8xf32>
    %cst_17 = arith.constant dense<0.000000e+00> : vector<8xf32>
    %22 = vector.multi_reduction <add>, %21, %cst_17 [1] : vector<8x8xf32> to vector<8xf32>
    %23 = vector.shape_cast %22 : vector<8xf32> to vector<8x1xf32>
    %24 = tpu.reciprocal %23 {approx = true} : vector<8x1xf32> -> vector<8x1xf32>
    %25 = vector.broadcast %24 : vector<8x1xf32> to vector<8x8xf32>
    %26 = arith.mulf %21, %25 : vector<8x8xf32>
    %27 = arith.truncf %26 : vector<8x8xf32> to vector<8x8xbf16>
    %cst_18 = arith.constant dense<0.000000e+00> : vector<8x8xf32>
    %28 = tpu.matmul %27, %15, %cst_18 {dimension_numbers = #tpu.dot_dimension_numbers<[1], [0], [0], [1], [0, 0, 1, 1], [], []>} : vector<8x8xbf16>, vector<8x8xbf16>, vector<8x8xf32> -> vector<8x8xf32>
    %29 = arith.truncf %28 : vector<8x8xf32> to vector<8x8xbf16>
    %c0_19 = arith.constant 0 : index
    %c0_20 = arith.constant 0 : index
    %30 = vector.load %arg17[%c0_19, %c0_20] : memref<8x32xbf16, #tpu.memory_space<vmem>>, vector<8x8xbf16>
    tpu.vector_store %arg17[%c0_19, %c0_20], %29 {strides = array<i32>} : memref<8x32xbf16, #tpu.memory_space<vmem>>, vector<8x8xbf16>,
    %c0_21 = arith.constant 0 : index
    %c8 = arith.constant 8 : index
    %31 = vector.load %arg14[%c0_21, %c8] : memref<8x32xbf16, #tpu.memory_space<vmem>>, vector<8x8xbf16>
    %c0_22 = arith.constant 0 : index
    %c8_23 = arith.constant 8 : index
    %32 = vector.load %arg15[%c0_22, %c8_23] : memref<8x32xbf16, #tpu.memory_space<vmem>>, vector<8x8xbf16>
    %c0_24 = arith.constant 0 : index
    %c8_25 = arith.constant 8 : index
    %33 = vector.load %arg16[%c0_24, %c8_25] : memref<8x32xbf16, #tpu.memory_space<vmem>>, vector<8x8xbf16>
    %cst_26 = arith.constant dense<0.000000e+00> : vector<8x8xf32>
    %34 = tpu.matmul %31, %32, %cst_26 {dimension_numbers = #tpu.dot_dimension_numbers<[1], [1], [0], [0], [0, 0, 1, 0], [], []>} : vector<8x8xbf16>, vector<8x8xbf16>, vector<8x8xf32> -> vector<8x8xf32>
    %cst_27 = arith.constant dense<0xFF800000> : vector<8xf32>
    %35 = vector.multi_reduction <maximumf>, %34, %cst_27 [1] : vector<8x8xf32> to vector<8xf32>
    %36 = vector.shape_cast %35 : vector<8xf32> to vector<8x1xf32>
    %37 = vector.broadcast %36 : vector<8x1xf32> to vector<8x8xf32>
    %38 = arith.subf %34, %37 : vector<8x8xf32>
    %39 = math.exp %38 : vector<8x8xf32>
    %cst_28 = arith.constant dense<0.000000e+00> : vector<8xf32>
    %40 = vector.multi_reduction <add>, %39, %cst_28 [1] : vector<8x8xf32> to vector<8xf32>
    %41 = vector.shape_cast %40 : vector<8xf32> to vector<8x1xf32>
    %42 = tpu.reciprocal %41 {approx = true} : vector<8x1xf32> -> vector<8x1xf32>
    %43 = vector.broadcast %42 : vector<8x1xf32> to vector<8x8xf32>
    %44 = arith.mulf %39, %43 : vector<8x8xf32>
    %45 = arith.truncf %44 : vector<8x8xf32> to vector<8x8xbf16>
    %cst_29 = arith.constant dense<0.000000e+00> : vector<8x8xf32>
    %46 = tpu.matmul %45, %33, %cst_29 {dimension_numbers = #tpu.dot_dimension_numbers<[1], [0], [0], [1], [0, 0, 1, 1], [], []>} : vector<8x8xbf16>, vector<8x8xbf16>, vector<8x8xf32> -> vector<8x8xf32>
    %47 = arith.truncf %46 : vector<8x8xf32> to vector<8x8xbf16>
    %c0_30 = arith.constant 0 : index
    %c8_31 = arith.constant 8 : index
    %48 = vector.load %arg17[%c0_30, %c8_31] : memref<8x32xbf16, #tpu.memory_space<vmem>>, vector<8x8xbf16>
    tpu.vector_store %arg17[%c0_30, %c8_31], %47 {strides = array<i32>} : memref<8x32xbf16, #tpu.memory_space<vmem>>, vector<8x8xbf16>,
    %c0_32 = arith.constant 0 : index
    %c16 = arith.constant 16 : index
    %49 = vector.load %arg14[%c0_32, %c16] : memref<8x32xbf16, #tpu.memory_space<vmem>>, vector<8x8xbf16>
    %c0_33 = arith.constant 0 : index
    %c16_34 = arith.constant 16 : index
    %50 = vector.load %arg15[%c0_33, %c16_34] : memref<8x32xbf16, #tpu.memory_space<vmem>>, vector<8x8xbf16>
    %c0_35 = arith.constant 0 : index
    %c16_36 = arith.constant 16 : index
    %51 = vector.load %arg16[%c0_35, %c16_36] : memref<8x32xbf16, #tpu.memory_space<vmem>>, vector<8x8xbf16>
    %cst_37 = arith.constant dense<0.000000e+00> : vector<8x8xf32>
    %52 = tpu.matmul %49, %50, %cst_37 {dimension_numbers = #tpu.dot_dimension_numbers<[1], [1], [0], [0], [0, 0, 1, 0], [], []>} : vector<8x8xbf16>, vector<8x8xbf16>, vector<8x8xf32> -> vector<8x8xf32>
    %cst_38 = arith.constant dense<0xFF800000> : vector<8xf32>
    %53 = vector.multi_reduction <maximumf>, %52, %cst_38 [1] : vector<8x8xf32> to vector<8xf32>
    %54 = vector.shape_cast %53 : vector<8xf32> to vector<8x1xf32>
    %55 = vector.broadcast %54 : vector<8x1xf32> to vector<8x8xf32>
    %56 = arith.subf %52, %55 : vector<8x8xf32>
    %57 = math.exp %56 : vector<8x8xf32>
    %cst_39 = arith.constant dense<0.000000e+00> : vector<8xf32>
    %58 = vector.multi_reduction <add>, %57, %cst_39 [1] : vector<8x8xf32> to vector<8xf32>
    %59 = vector.shape_cast %58 : vector<8xf32> to vector<8x1xf32>
    %60 = tpu.reciprocal %59 {approx = true} : vector<8x1xf32> -> vector<8x1xf32>
    %61 = vector.broadcast %60 : vector<8x1xf32> to vector<8x8xf32>
    %62 = arith.mulf %57, %61 : vector<8x8xf32>
    %63 = arith.truncf %62 : vector<8x8xf32> to vector<8x8xbf16>
    %cst_40 = arith.constant dense<0.000000e+00> : vector<8x8xf32>
    %64 = tpu.matmul %63, %51, %cst_40 {dimension_numbers = #tpu.dot_dimension_numbers<[1], [0], [0], [1], [0, 0, 1, 1], [], []>} : vector<8x8xbf16>, vector<8x8xbf16>, vector<8x8xf32> -> vector<8x8xf32>
    %65 = arith.truncf %64 : vector<8x8xf32> to vector<8x8xbf16>
    %c0_41 = arith.constant 0 : index
    %c16_42 = arith.constant 16 : index
    %66 = vector.load %arg17[%c0_41, %c16_42] : memref<8x32xbf16, #tpu.memory_space<vmem>>, vector<8x8xbf16>
    tpu.vector_store %arg17[%c0_41, %c16_42], %65 {strides = array<i32>} : memref<8x32xbf16, #tpu.memory_space<vmem>>, vector<8x8xbf16>,
    %c0_43 = arith.constant 0 : index
    %c24 = arith.constant 24 : index
    %67 = vector.load %arg14[%c0_43, %c24] : memref<8x32xbf16, #tpu.memory_space<vmem>>, vector<8x8xbf16>
    %c0_44 = arith.constant 0 : index
    %c24_45 = arith.constant 24 : index
    %68 = vector.load %arg15[%c0_44, %c24_45] : memref<8x32xbf16, #tpu.memory_space<vmem>>, vector<8x8xbf16>
    %c0_46 = arith.constant 0 : index
    %c24_47 = arith.constant 24 : index
    %69 = vector.load %arg16[%c0_46, %c24_47] : memref<8x32xbf16, #tpu.memory_space<vmem>>, vector<8x8xbf16>
    %cst_48 = arith.constant dense<0.000000e+00> : vector<8x8xf32>
    %70 = tpu.matmul %67, %68, %cst_48 {dimension_numbers = #tpu.dot_dimension_numbers<[1], [1], [0], [0], [0, 0, 1, 0], [], []>} : vector<8x8xbf16>, vector<8x8xbf16>, vector<8x8xf32> -> vector<8x8xf32>
    %cst_49 = arith.constant dense<0xFF800000> : vector<8xf32>
    %71 = vector.multi_reduction <maximumf>, %70, %cst_49 [1] : vector<8x8xf32> to vector<8xf32>
    %72 = vector.shape_cast %71 : vector<8xf32> to vector<8x1xf32>
    %73 = vector.broadcast %72 : vector<8x1xf32> to vector<8x8xf32>
    %74 = arith.subf %70, %73 : vector<8x8xf32>
    %75 = math.exp %74 : vector<8x8xf32>
    %cst_50 = arith.constant dense<0.000000e+00> : vector<8xf32>
    %76 = vector.multi_reduction <add>, %75, %cst_50 [1] : vector<8x8xf32> to vector<8xf32>
    %77 = vector.shape_cast %76 : vector<8xf32> to vector<8x1xf32>
    %78 = tpu.reciprocal %77 {approx = true} : vector<8x1xf32> -> vector<8x1xf32>
    %79 = vector.broadcast %78 : vector<8x1xf32> to vector<8x8xf32>
    %80 = arith.mulf %75, %79 : vector<8x8xf32>
    %81 = arith.truncf %80 : vector<8x8xf32> to vector<8x8xbf16>
    %cst_51 = arith.constant dense<0.000000e+00> : vector<8x8xf32>
    %82 = tpu.matmul %81, %69, %cst_51 {dimension_numbers = #tpu.dot_dimension_numbers<[1], [0], [0], [1], [0, 0, 1, 1], [], []>} : vector<8x8xbf16>, vector<8x8xbf16>, vector<8x8xf32> -> vector<8x8xf32>
    %83 = arith.truncf %82 : vector<8x8xf32> to vector<8x8xbf16>
    %c0_52 = arith.constant 0 : index
    %c24_53 = arith.constant 24 : index
    %84 = vector.load %arg17[%c0_52, %c24_53] : memref<8x32xbf16, #tpu.memory_space<vmem>>, vector<8x8xbf16>
    tpu.vector_store %arg17[%c0_52, %c24_53], %83 {strides = array<i32>} : memref<8x32xbf16, #tpu.memory_space<vmem>>, vector<8x8xbf16>,
    %c0_54 = arith.constant 0 : index
    %c0_55 = arith.constant 0 : index
    %85 = vector.load %arg17[%c0_54, %c0_55] : memref<8x32xbf16, #tpu.memory_space<vmem>>, vector<8x32xbf16>
    %c0_56 = arith.constant 0 : index
    %c0_57 = arith.constant 0 : index
    %86 = vector.load %arg8[%c0_56, %c0_57] : memref<32x32xbf16, #tpu.memory_space<vmem>>, vector<32x32xbf16>
    %cst_58 = arith.constant dense<0.000000e+00> : vector<8x32xf32>
    %87 = tpu.matmul %85, %86, %cst_58 {dimension_numbers = #tpu.dot_dimension_numbers<[1], [1], [0], [0], [0, 0, 1, 0], [], []>} : vector<8x32xbf16>, vector<32x32xbf16>, vector<8x32xf32> -> vector<8x32xf32>
    %c0_59 = arith.constant 0 : index
    %c0_60 = arith.constant 0 : index
    %88 = vector.load %arg12[%c0_59, %c0_60] : memref<1x32xf32, #tpu.memory_space<vmem>>, vector<1x32xf32>
    %89 = vector.broadcast %88 : vector<1x32xf32> to vector<8x32xf32>
    %90 = arith.addf %87, %89 : vector<8x32xf32>
    %c0_61 = arith.constant 0 : index
    %c0_62 = arith.constant 0 : index
    %c0_63 = arith.constant 0 : index
    %91 = vector.load %arg13[%c0_61, %c0_62, %c0_63] : memref<1x8x32xf32, #tpu.memory_space<vmem>>, vector<1x8x32xf32>
    %92 = vector.shape_cast %91 : vector<1x8x32xf32> to vector<8x32xf32>
    %93 = vector.shape_cast %90 : vector<8x32xf32> to vector<1x8x32xf32>
    tpu.vector_store %arg13[%c0_61, %c0_62, %c0_63], %93 {strides = array<i32>} : memref<1x8x32xf32, #tpu.memory_space<vmem>>, vector<1x8x32xf32>,
    return
  }
  func.func @transform_0(%arg0: i32, %arg1: i32) -> (i32, i32, i32) {
    %c0_i32 = arith.constant 0 : i32
    %c0_i32_0 = arith.constant 0 : i32
    return %arg0, %arg1, %c0_i32 : i32, i32, i32
  }
  func.func @transform_1(%arg0: i32, %arg1: i32) -> (i32, i32, i32) {
    %c0_i32 = arith.constant 0 : i32
    %c0_i32_0 = arith.constant 0 : i32
    %c0_i32_1 = arith.constant 0 : i32
    return %arg0, %c0_i32, %c0_i32_0 : i32, i32, i32
  }
  func.func @transform_2(%arg0: i32, %arg1: i32) -> (i32, i32, i32) {
    %c0_i32 = arith.constant 0 : i32
    %c0_i32_0 = arith.constant 0 : i32
    %c0_i32_1 = arith.constant 0 : i32
    return %arg0, %c0_i32, %c0_i32_0 : i32, i32, i32
  }
  func.func @transform_3(%arg0: i32, %arg1: i32) -> (i32, i32) {
    %c0_i32 = arith.constant 0 : i32
    %c0_i32_0 = arith.constant 0 : i32
    %c0_i32_1 = arith.constant 0 : i32
    return %c0_i32, %c0_i32_0 : i32, i32
  }
  func.func @transform_4(%arg0: i32, %arg1: i32) -> (i32, i32) {
    %c0_i32 = arith.constant 0 : i32
    %c0_i32_0 = arith.constant 0 : i32
    %c0_i32_1 = arith.constant 0 : i32
    return %c0_i32, %c0_i32_0 : i32, i32
  }
  func.func @transform_5(%arg0: i32, %arg1: i32) -> (i32, i32) {
    %c0_i32 = arith.constant 0 : i32
    %c0_i32_0 = arith.constant 0 : i32
    %c0_i32_1 = arith.constant 0 : i32
    return %c0_i32, %c0_i32_0 : i32, i32
  }
  func.func @transform_6(%arg0: i32, %arg1: i32) -> (i32, i32) {
    %c0_i32 = arith.constant 0 : i32
    %c0_i32_0 = arith.constant 0 : i32
    %c0_i32_1 = arith.constant 0 : i32
    return %c0_i32, %c0_i32_0 : i32, i32
  }
  func.func @transform_7(%arg0: i32, %arg1: i32) -> (i32, i32) {
    %c0_i32 = arith.constant 0 : i32
    %c0_i32_0 = arith.constant 0 : i32
    %c0_i32_1 = arith.constant 0 : i32
    return %c0_i32, %c0_i32_0 : i32, i32
  }
  func.func @transform_8(%arg0: i32, %arg1: i32) -> (i32, i32) {
    %c0_i32 = arith.constant 0 : i32
    %c0_i32_0 = arith.constant 0 : i32
    %c0_i32_1 = arith.constant 0 : i32
    return %c0_i32, %c0_i32_0 : i32, i32
  }
  func.func @transform_9(%arg0: i32, %arg1: i32) -> (i32, i32) {
    %c0_i32 = arith.constant 0 : i32
    %c0_i32_0 = arith.constant 0 : i32
    %c0_i32_1 = arith.constant 0 : i32
    return %c0_i32, %c0_i32_0 : i32, i32
  }
  func.func @transform_10(%arg0: i32, %arg1: i32) -> (i32, i32) {
    %c0_i32 = arith.constant 0 : i32
    %c0_i32_0 = arith.constant 0 : i32
    %c0_i32_1 = arith.constant 0 : i32
    return %c0_i32, %c0_i32_0 : i32, i32
  }
  func.func @transform_11(%arg0: i32, %arg1: i32) -> (i32, i32, i32) {
    %c0_i32 = arith.constant 0 : i32
    %c0_i32_0 = arith.constant 0 : i32
    return %arg0, %arg1, %c0_i32 : i32, i32, i32
  }
}

</mosaic_0001>

<bundles_post_ra>
// kernel: tpu_custom_call.1
= control target key start
LH: loop header
LB: loop body
LE: loop exit
PB: predicated region body
PF: predicated region fallthrough
CT: control target
= control target key end

     0   :  { %s2625_s0 = inlined_call_operand.hbm [shape: f32[2,8,32], index: 0, kind: input, shape index: {}]   ;;  %s2626_s1 = inlined_call_operand.hbm [shape: f32[2,8,32], index: 1, kind: input, shape index: {}]   ;;  %s2627_s2 = inlined_call_operand.hbm [shape: f32[2,8,32], index: 2, kind: input, shape index: {}]   ;;  %s2628_s3 = inlined_call_operand.hbm [shape: bf16[32,32], index: 3, kind: input, shape index: {}]   ;;  %s2629_s4 = inlined_call_operand.hbm [shape: bf16[32,32], index: 4, kind: input, shape index: {}]   ;;  %s2630_s5 = inlined_call_operand.vmem [shape: bf16[32,32], index: 5, kind: input, shape index: {}]   ;;  %s2631_s6 = inlined_call_operand.hbm [shape: bf16[32,32], index: 6, kind: input, shape index: {}]   ;;  %s2632_s7 = inlined_call_operand.vmem [shape: f32[1,32], index: 7, kind: input, shape index: {}]   ;;  %s2633_s8 = inlined_call_operand.vmem [shape: f32[1,32], index: 8, kind: input, shape index: {}]   ;;  %s2634_s9 = inlined_call_operand.vmem [shape: f32[1,32], index: 9, kind: input, shape index: {}]   ;;  %s2635_s10 = inlined_call_operand.vmem [shape: f32[1,32], index: 10, kind: input, shape index: {}]   ;;  %s2636_s11 = inlined_call_operand.hbm [shape: f32[2,8,32], index: 11, kind: output, shape index: {}]  }
   0x1   :  { %2663 = sst [smem:[#allocation31_spill]] %s2626_s1 }
   0x2   :  { %2664 = sst [smem:[#allocation32_spill]] %s2628_s3 }
   0x3   :  { %2665 = sst [smem:[#allocation33_spill]] %s2632_s7 }
   0x4   :  { %2666 = sst [smem:[#allocation34_spill]] %s2633_s8 }
   0x5   :  { %2667 = sst [smem:[#allocation35_spill]] %s2634_s9 }
   0x6   :  { %2668 = sst [smem:[#allocation36_spill]] %s2635_s10 }
   0x7   :  { %2669 = sst [smem:[#allocation37_spill]] %s2636_s11 }
   0x8   :  { %16 = vsyncpa [#allocation7], 0 }
   0x9   :  { %18 = vsyncpa [#allocation7 + $0x1], 0 }
   0xa   :  { %19 = vsyncpa [#allocation10], 0 }
   0xb   :  { %21 = vsyncpa [#allocation10 + $0x1], 0 }
   0xc   :  { %22 = vsyncpa [#allocation13], 0 }
   0xd   :  { %23 = vsyncpa [#allocation16], 0 }
   0xe   :  { %24 = vsyncpa [#allocation8], 0 }
   0xf   :  { %26 = vsyncpa [#allocation8 + $0x1], 0  ;;  %s2174_s17 = smov 0   ;;  %s2176_s18 = smov 0  }
  0x10   :  { %s2178_s19 = smov 0   ;;  %s2180_s20 = smov 0  }
  0x11   :  { %s2182_s21 = smov 0   ;;  %s2184_s22 = smov 0  }
  0x12 LB: > { %2670 = sst [smem:[#allocation23_spill]] %s2075_s17  ;;  %s2205_s23 = sadd.s32 4294967295, %s2095_s22   ;;  %s2095_s22 = sphi %s2184_s22, %s32_s22   ;;  %s2091_s21 = sphi %s2182_s21, %s2718_s21   ;;  %s2087_s20 = sphi %s2180_s20, %s2717_s20   ;;  %s2083_s19 = sphi %s2178_s19, %s2721_s19   ;;  %s2079_s18 = sphi %s2176_s18, %s2720_s18   ;;  %s2075_s17 = sphi %s2174_s17, %s2719_s17  }
  0x13   : > { %2671 = sst [smem:[#allocation24_spill]] %s2087_s20  ;;  %s1510_s24 = sadd.s32 4294967294, %s2095_s22  }
  0x14   : > { %2672 = sst [smem:[#allocation25_spill]] %s2091_s21  ;;  %p66_p0 = scmp.ne.s32.totalorder %s2079_s18, %s2075_s17 }
  0x15   : > { %2673 = sst [smem:[#allocation26_spill]] %s2095_s22  ;;  %p2639_p1 = scmp.eq.s32.totalorder %s2205_s23, 0 }
  0x16   : > { %p318_p3 = scmp.eq.s32.totalorder %s1510_s24, 1  ;;  %p1511_p5 = scmp.ge.s32.totalorder %s2095_s22, 1 }
  0x17   : > { %p2214_p4 = por %p2639_p1, %p66_p0  ;;  %p325_p7 = scmp.lt.s32.totalorder %s2095_s22, 3 }
  0x18   : > { %p2219_p6 = por %p318_p3, %p66_p0  ;;  %s2097_s28 = smov [#allocation12]  }
  0x19   : > { %s2674_s25 = scalar_select %p2214_p4, 1, 0 }
  0x1a   : > { %s2675_s26 = scalar_select %p2219_p6, 1, 0 }
  0x1b   : > { %p2224_p8 = pnand %p1511_p5, %p325_p7  ;;  %s337_s29 = sshll.u32 %s2097_s28, 4  ;;  %s338_s29 = int_to_ptr.vmem [resolvable:$true] %s337_s29 }
  0x1c   : > { %2676 = sst [smem:[#allocation27_spill]] %s2675_s26  ;;  %s44_s12 = sadd.s32 1, %s2091_s21 }
  0x1d   : > { %s2677_s27 = scalar_select %p2224_p8, 1, 0 }
  0x1e   : > { %p1701_p9 = pneg %p2224_p8  ;;  %s2679_s3 = sld [smem:[#allocation32_spill]] }
  0x20   : > { %p2233_p11 = pnand %p1701_p9, %p2639_p1 }
  0x22   : > { %s2678_s30 = scalar_select %p2233_p11, 1, 0 }
  0x23   : > { %p2246_p13 = pneg %p2233_p11 }
  0x24   : > { %s1827_s15 = scalar_lea.hbm %s2679_s3, 256 }
  0x25   : > { %p1828_p12 = scmp.ne.s32.totalorder %s2679_s3, %s1827_s15  ;;  %p1834_p5 = scmp.lt.u32.totalorder %s1827_s15, %s2679_s3 }
  0x26   : > { %s2680_s28 = scalar_select %p2246_p13, 1, 0 }
  0x27   : > { %p1830_p0 = pnand %p2246_p13, %p1828_p12 }
  0x29   : > { %p1831_p3 = pneg %p1830_p0 }
  0x2b   : > { %p1836_p7 = pnand %p1834_p5, %p1831_p3 }
  0x2d   : > { %1839 = shalt.err (!%p1836_p7)
}
  0x2e   : > { %s1840_s13 = scalar_lea.vmem %s338_s29, 256  ;;  %p1848_p2 = scmp.lt.s32.totalorder %s338_s29, %s338_s29 }
  0x2f   : > { %p1841_p9 = scmp.ne.s32.totalorder %s338_s29, %s1840_s13  ;;  %p1849_p6 = scmp.lt.s32.totalorder %s1840_s13, %s1840_s13 }
  0x31   : > { %p1843_p10 = pnand %p1841_p9, %p2246_p13  ;;  %p1850_p4 = por %p1849_p6, %p1848_p2 }
  0x33   : > { %p1844_p1 = pneg %p1843_p10 }
  0x35   : > { %p1851_p8 = pnand %p1850_p4, %p1844_p1 }
  0x37   : > { %1854 = shalt.err (!%p1851_p8)
}
  0x38   : > { %s2643_s14 = smov 64   ;;  %s2645_s17 = smov 4  }
  0x39   : > { %1704 = dma.hbm_to_vmem [thread:$0]  (!%p2233_p11), %s2679_s3, 256, %s338_s29, [#allocation13], %s2643_s14, %s2643_s14, %s2645_s17  }
  0x3a   : > { %p46_p1 = scmp.ge.s32.totalorder %s44_s12, 2  ;;  %s53_s16 = sadd.s32 1, %s2083_s19 }
  0x3b   : > { %p60_p2 = scmp.ne.s32.totalorder %s2083_s19, %s2079_s18  ;;  %p61_p4 = scmp.eq.s32.totalorder %s2095_s22, 0 }
  0x3c   : > { %s2723_s12 = smov (%p46_p1, %s44_s12), 0  ;;  %p2682_p8 = scmp.eq.s32.totalorder %s2205_s23, 1 }
  0x3d   : > { %2681 = sst [smem:[#allocation28_spill]] %s2723_s12  ;;  %p62_p6 = por %p61_p4, %p60_p2 }
  0x3e   : > { %p2273_p10 = por %p2682_p8, %p60_p2  ;;  %s48_s13 = ssub.s32 %s2091_s21, %s2723_s12 }
  0x3f   : > { %p1728_p12 = scmp.lt.s32.totalorder %s2095_s22, 2  ;;  %p51_p0 = scmp.eq.s32.totalorder %s48_s13, 0 }
  0x40   : > { %s2683_s24 = scalar_select %p2273_p10, 1, 0 }
  0x41   : > { %s2648_s11 = sand.u32 1, %s2083_s19   ;;  %s2286_s26 = sshll.u32 %s2091_s21, 7 }
  0x42   : > { %2684 = sst [smem:[#allocation29_spill]] %s2683_s24  ;;  %s2283_s29 = sshll.u32 %s2648_s11, 3 }
  0x43   : > { %s2289_s15 = scalar_select %p51_p0, %s2083_s19, %s53_s16  }
  0x44   : > { %p2291_p3 = pnand %p1728_p12, %p62_p6  ;;  %s411_s17 = sand.u32 1, %s2095_s22  }
  0x45   : > { %2685 = sst [smem:[#allocation30_spill]] %s2289_s15  ;;  %s2687_s1 = sld [smem:[#allocation31_spill]] }
  0x46   : > { %s2686_s14 = scalar_select %p2291_p3, 1, 0 }
  0x47   : > { %s415_s11 = scalar_lea.vmem [#allocation9], %s2283_s29  ;;  %s2100_s16 = smov [#allocation14]  }
  0x48   : > { %s422_s21 = sshll.u32 %s415_s11, 4  ;;  %s2305_s15 = sshll.u32 %s2100_s16, 4  ;;  %s2303_s21 = int_to_ptr.vmem [resolvable:$true] %s422_s21  ;;  %s351_s15 = int_to_ptr.vmem [resolvable:$true] %s2305_s15 }
  0x49   : > { %s2307_s24 = scalar_lea.sflag [#allocation10], %s411_s17  ;;  %p2313_p7 = pneg %p2291_p3 }
  0x4b   : > { %s2300_s13 = scalar_lea.hbm %s2687_s1, %s2286_s26  ;;  %s1860_s22 = scalar_lea.hbm %s2687_s1, 256 }
  0x4c   : > { %s1855_s10 = scalar_lea.hbm %s2300_s13, 128  ;;  %p1861_p2 = scmp.lt.u32.totalorder %s2300_s13, %s2687_s1 }
  0x4d   : > { %p1856_p5 = scmp.ne.s32.totalorder %s2300_s13, %s1855_s10  ;;  %p1862_p4 = scmp.lt.u32.totalorder %s1860_s22, %s1855_s10 }
  0x4e   : > { %s2688_s3 = scalar_select %p2313_p7, 1, 0 }
  0x4f   : > { %p1858_p9 = pnand %p2313_p7, %p1856_p5  ;;  %p1863_p6 = por %p1862_p4, %p1861_p2 }
  0x50   : > { %p1864_p8 = scmp.lt.u32.totalorder %s1855_s10, %s2300_s13 }
  0x51   : > { %p1859_p1 = pneg %p1858_p9 }
  0x52   : > { %p1865_p12 = por %p1864_p8, %p1863_p6 }
  0x54   : > { %p1866_p0 = pnand %p1865_p12, %p1859_p1 }
  0x56   : > { %1869 = shalt.err (!%p1866_p0)
}
  0x57   : > { %s1870_s17 = scalar_lea.vmem %s2303_s21, 128  ;;  %s2101_s12 = smov [#allocation9]  }
  0x58   : > { %p1871_p5 = scmp.ne.s32.totalorder %s2303_s21, %s1870_s17  ;;  %s1875_s11 = sshll.u32 %s2101_s12, 4  ;;  %s1876_s11 = int_to_ptr.vmem [resolvable:$false] %s1875_s11 }
  0x59   : > { %s1877_s20 = scalar_lea.vmem %s1876_s11, 256  ;;  %p1878_p11 = scmp.lt.s32.totalorder %s2303_s21, %s1876_s11 }
  0x5a   : > { %p1873_p9 = pnand %p1871_p5, %p2313_p7  ;;  %p1879_p13 = scmp.lt.s32.totalorder %s1877_s20, %s1870_s17 }
  0x5c   : > { %p1874_p10 = pneg %p1873_p9  ;;  %p1880_p2 = por %p1879_p13, %p1878_p11 }
  0x5e   : > { %p1881_p4 = pnand %p1880_p2, %p1874_p10 }
  0x60   : > { %1884 = shalt.err (!%p1881_p4)
}
  0x61   : > { %1717 = dma.hbm_to_vmem [thread:$0]  (!%p2291_p3), %s2300_s13, 128, %s2303_s21, %s2307_s24  }
  0x62   : > { %s1885_s16 = scalar_lea.hbm %s2629_s4, 256  ;;  %p2689_p11 = scmp.ne.s32.totalorder %s2680_s28, 0 }
  0x63   : > { %p1886_p1 = scmp.ne.s32.totalorder %s2629_s4, %s1885_s16  ;;  %p1892_p6 = scmp.lt.u32.totalorder %s1885_s16, %s2629_s4 }
  0x65   : > { %p1888_p13 = pnand %p1886_p1, %p2689_p11 }
  0x67   : > { %p1889_p10 = pneg %p1888_p13 }
  0x69   : > { %p1894_p8 = pnand %p1892_p6, %p1889_p10 }
  0x6b   : > { %1897 = shalt.err (!%p1894_p8)
}
  0x6c   : > { %s1898_s20 = scalar_lea.vmem %s351_s15, 256  ;;  %p1906_p9 = scmp.lt.s32.totalorder %s351_s15, %s351_s15 }
  0x6d   : > { %p1899_p12 = scmp.ne.s32.totalorder %s351_s15, %s1898_s20  ;;  %p1907_p2 = scmp.lt.s32.totalorder %s1898_s20, %s1898_s20 }
  0x6f   : > { %p1901_p0 = pnand %p1899_p12, %p2689_p11  ;;  %p1908_p4 = por %p1907_p2, %p1906_p9 }
  0x71   : > { %p1902_p5 = pneg %p1901_p0 }
  0x73   : > { %p1909_p3 = pnand %p1908_p4, %p1902_p5 }
  0x75   : > { %1912 = shalt.err (!%p1909_p3)
}
  0x76   : > { %p2690_p1 = scmp.ne.s32.totalorder %s2678_s30, 0  ;;  %s2691_s1 = smov 4  }
  0x77   : > { %s2692_s21 = smov 64   ;;  %s2102_s22 = smov [#allocation15]  }
  0x78   : > { %1707 = dma.hbm_to_vmem [thread:$0]  (!%p2690_p1), %s2629_s4, 256, %s351_s15, [#allocation13], %s2692_s21, %s2692_s21, %s2691_s1  }
  0x79   : > { %s366_s16 = sshll.u32 %s2102_s22, 4  ;;  %s1913_s11 = scalar_lea.hbm %s2631_s6, 256  ;;  %s367_s16 = int_to_ptr.vmem [resolvable:$true] %s366_s16 }
  0x7a   : > { %p1914_p3 = scmp.ne.s32.totalorder %s2631_s6, %s1913_s11  ;;  %p1920_p6 = scmp.lt.u32.totalorder %s1913_s11, %s2631_s6 }
  0x7c   : > { %p1916_p13 = pnand %p1914_p3, %p2689_p11 }
  0x7e   : > { %p1917_p10 = pneg %p1916_p13 }
  0x80   : > { %p1922_p8 = pnand %p1920_p6, %p1917_p10 }
  0x82   : > { %1925 = shalt.err (!%p1922_p8)
}
  0x83   : > { %s1926_s15 = scalar_lea.vmem %s367_s16, 256  ;;  %p1934_p9 = scmp.lt.s32.totalorder %s367_s16, %s367_s16 }
  0x84   : > { %p1927_p12 = scmp.ne.s32.totalorder %s367_s16, %s1926_s15  ;;  %p1935_p2 = scmp.lt.s32.totalorder %s1926_s15, %s1926_s15 }
  0x86   : > { %p1929_p0 = pnand %p1927_p12, %p2689_p11  ;;  %p1936_p4 = por %p1935_p2, %p1934_p9 }
  0x88   : > { %p1930_p5 = pneg %p1929_p0 }
  0x8a   : > { %p1937_p7 = pnand %p1936_p4, %p1930_p5 }
  0x8c   : > { %1940 = shalt.err (!%p1937_p7)
}
  0x8d   : > { %1710 = dma.hbm_to_vmem [thread:$0]  (!%p2690_p1), %s2631_s6, 256, %s367_s16, [#allocation16], %s2692_s21, %s2692_s21, %s2691_s1  }
  0x8e   : > { %s2384_s13 = scalar_lea.hbm %s2625_s0, %s2286_s26  ;;  %s396_s30 = scalar_lea.vmem [#allocation6], %s2283_s29 }
  0x8f   : > { %s404_s10 = sshll.u32 %s396_s30, 4  ;;  %s2693_s22 = sand.u32 1, %s2083_s19   ;;  %s405_s10 = int_to_ptr.vmem [resolvable:$true] %s404_s10 }
  0x90   : > { %s393_s12 = scalar_lea.sflag [#allocation7], %s2693_s22  ;;  %s1941_s17 = scalar_lea.hbm %s2384_s13, 128 }
  0x91   : > { %p1942_p7 = scmp.ne.s32.totalorder %s2384_s13, %s1941_s17  ;;  %p2694_p11 = scmp.ne.s32.totalorder %s2688_s3, 0 }
  0x92   : > { %s1946_s16 = scalar_lea.hbm %s2625_s0, 256  ;;  %p1947_p1 = scmp.lt.u32.totalorder %s2384_s13, %s2625_s0 }
  0x93   : > { %p1944_p3 = pnand %p1942_p7, %p2694_p11  ;;  %p1948_p10 = scmp.lt.u32.totalorder %s1946_s16, %s1941_s17 }
  0x94   : > { %p1950_p8 = scmp.lt.u32.totalorder %s1941_s17, %s2384_s13 }
  0x95   : > { %p1945_p13 = pneg %p1944_p3  ;;  %p1949_p6 = por %p1948_p10, %p1947_p1 }
  0x97   : > { %p1951_p12 = por %p1950_p8, %p1949_p6 }
  0x99   : > { %p1952_p0 = pnand %p1951_p12, %p1945_p13 }
  0x9b   : > { %1955 = shalt.err (!%p1952_p0)
}
  0x9c   : > { %s1956_s15 = scalar_lea.vmem %s405_s10, 128  ;;  %s2103_s7 = smov [#allocation6]  }
  0x9d   : > { %p1957_p5 = scmp.ne.s32.totalorder %s405_s10, %s1956_s15  ;;  %s1961_s8 = sshll.u32 %s2103_s7, 4  ;;  %s1962_s8 = int_to_ptr.vmem [resolvable:$false] %s1961_s8 }
  0x9e   : > { %s1963_s9 = scalar_lea.vmem %s1962_s8, 256  ;;  %p1964_p4 = scmp.lt.s32.totalorder %s405_s10, %s1962_s8 }
  0x9f   : > { %p1959_p9 = pnand %p1957_p5, %p2694_p11  ;;  %p1965_p7 = scmp.lt.s32.totalorder %s1963_s9, %s1956_s15 }
  0xa1   : > { %p1960_p2 = pneg %p1959_p9  ;;  %p1966_p3 = por %p1965_p7, %p1964_p4 }
  0xa3   : > { %p1967_p1 = pnand %p1966_p3, %p1960_p2 }
  0xa5   : > { %1970 = shalt.err (!%p1967_p1)
}
  0xa6   : > { %p2695_p10 = scmp.ne.s32.totalorder %s2686_s14, 0  ;;  %s2410_s22 = scalar_lea.hbm %s2627_s2, %s2286_s26 }
  0xa7   : > { %s433_s17 = scalar_lea.vmem [#allocation11], %s2283_s29  ;;  %s1971_s21 = scalar_lea.hbm %s2410_s22, 128 }
  0xa8   : > { %1714 = dma.hbm_to_vmem [thread:$0]  (!%p2695_p10), %s2384_s13, 128, %s405_s10, %s393_s12  }
  0xa9   : > { %s440_s1 = sshll.u32 %s433_s17, 4  ;;  %p1972_p13 = scmp.ne.s32.totalorder %s2410_s22, %s1971_s21  ;;  %s441_s1 = int_to_ptr.vmem [resolvable:$true] %s440_s1 }
  0xaa   : > { %s1976_s13 = scalar_lea.hbm %s2627_s2, 256  ;;  %p1977_p12 = scmp.lt.u32.totalorder %s2410_s22, %s2627_s2 }
  0xab   : > { %p1974_p6 = pnand %p1972_p13, %p2694_p11  ;;  %p1978_p0 = scmp.lt.u32.totalorder %s1976_s13, %s1971_s21 }
  0xac   : > { %p1980_p9 = scmp.lt.u32.totalorder %s1971_s21, %s2410_s22 }
  0xad   : > { %p1975_p8 = pneg %p1974_p6  ;;  %p1979_p5 = por %p1978_p0, %p1977_p12 }
  0xaf   : > { %p1981_p2 = por %p1980_p9, %p1979_p5 }
  0xb1   : > { %p1982_p4 = pnand %p1981_p2, %p1975_p8 }
  0xb3   : > { %1985 = shalt.err (!%p1982_p4)
}
  0xb4   : > { %s1986_s29 = scalar_lea.vmem %s441_s1, 128  ;;  %s2104_s26 = smov [#allocation11]  }
  0xb5   : > { %p1987_p7 = scmp.ne.s32.totalorder %s441_s1, %s1986_s29  ;;  %s1991_s20 = sshll.u32 %s2104_s26, 4  ;;  %s1992_s20 = int_to_ptr.vmem [resolvable:$false] %s1991_s20 }
  0xb6   : > { %s1993_s15 = scalar_lea.vmem %s1992_s20, 256  ;;  %p1994_p13 = scmp.lt.s32.totalorder %s441_s1, %s1992_s20 }
  0xb7   : > { %p1989_p3 = pnand %p1987_p7, %p2694_p11  ;;  %p1995_p6 = scmp.lt.s32.totalorder %s1993_s15, %s1986_s29 }
  0xb9   : > { %p1990_p1 = pneg %p1989_p3  ;;  %p1996_p10 = por %p1995_p6, %p1994_p13 }
  0xbb   : > { %p1997_p0 = pnand %p1996_p10, %p1990_p1 }
  0xbd   : > { %2000 = shalt.err (!%p1997_p0)
}
  0xbe   : > { %p2696_p12 = scmp.ne.s32.totalorder %s2686_s14, 0  ;;  %p2697_p8 = scmp.ne.s32.totalorder %s2677_s27, 0 }
  0xbf   : > { %s2434_s3 = sand.u32 (!%p2697_p8), 1, %s2079_s18   ;;  %p2698_p11 = scmp.ne.s32.totalorder (!%p2697_p8), %s2674_s25, 0 }
  0xc0   : > { %1720 = dma.hbm_to_vmem [thread:$0]  (!%p2696_p12), %s2410_s22, 128, %s441_s1, %s2307_s24  }
  0xc1   : > { %449 = sbr.rel (%p2697_p8) target bundleno = 2122 (0x84a), region = 64  ;;  %s2437_s7 = sshll.u32 (!%p2697_p8), %s2434_s3, 3 }
  0xc2   : > { %s452_s8 = scalar_lea.sflag (!%p2697_p8), [#allocation7], %s2434_s3  ;;  %s455_s9 = scalar_lea.vmem (!%p2697_p8), [#allocation6], %s2437_s7 }
  0xc8   : > { %2054 = dma.done.wait (%p2698_p11), %s452_s8, 128  }
  0xc9   : > { %2056 = vsyncadd (%p2698_p11), %s452_s8, 4294967168  ;;  %s460_s27 = sand.u32 1, %s2205_s23   ;;  %s464_s24 = scalar_lea.vmem [#allocation9], %s2437_s7 }
  0xca   : > { %s461_s14 = scalar_lea.sflag [#allocation10], %s460_s27 }
  0xcb   : > { %2058 = dma.done.wait (%p2698_p11), %s461_s14, 256  }
  0xcc   : > { %2060 = vsyncadd (%p2698_p11), %s461_s14, 4294967040  ;;  %s473_s28 = scalar_lea.vmem [#allocation11], %s2437_s7  ;;  %p2699_p10 = scmp.eq.s32.totalorder %s2205_s23, 0 }
  0xce   : > { %2062 = dma.done.wait (%p2699_p10), [#allocation13], 512   ;;  %p2700_p5 = pmov %p2699_p10 }
  0xd0   : > { %2064 = vsyncadd (%p2700_p5), [#allocation13], 4294966784  ;;  %p2701_p9 = pmov %p2700_p5 }
  0xd1   : > { %p2702_p2 = pmov %p2700_p5 }
  0xd2   : > { %2066 = dma.done.wait (%p2701_p9), [#allocation16], 256  }
  0xd3   : > { %2068 = vsyncadd (%p2702_p2), [#allocation16], 4294967040  ;;  %v2105_v0 = vmov 0.0   ;;  %vm2106_vm0 = vmmov 0   ;;  %vm564_vm1 = vcmask 261120   ;;  %v1794_v1 = vld [vmem:[#allocation14] sm:$0xff]  }
  0xd4   : > { %1601 = vmatprep.subr.bf16.mxu0 %v2105_v0  ;;  %1605 = vmatprep.mubr.msk.bf16.mxu0 %vm2106_vm0, %v2105_v0  ;;  %v569_v2 = vsel %vm564_vm1, %v1794_v1, 0  ;;  %v1795_v3 = vld [vmem:[#allocation14 + $0x8] sm:$0xff]   ;;  %v1798_v4 = vld [vmem:[%s2630_s5] sm:$0xff]   ;;  %v1797_v11 = vld [vmem:[#allocation12 + $0x8] sm:$0xff]   ;;  %s2703_s21 = sld [smem:[#allocation34_spill]]  ;;  %vm685_vm2 = vcmask 257024  }
  0xd5   : > { %1609 = vmatprep.subr.bf16.mxu1 %v2105_v0  ;;  %1613 = vmatprep.mubr.msk.bf16.mxu1 %vm2106_vm0, %v2105_v0  ;;  %v639_v5 = vsel %vm564_vm1, %v1798_v4, 0  ;;  %v572_v6 = vsel %vm564_vm1, %v1795_v3, 0  ;;  %v539_v7 = vld [vmem:[%s464_s24] sm:$0xff]  ;;  %v720_v12 = vsel %vm564_vm1, %v1797_v11, 0  ;;  %v689_v13 = vld [vmem:[%s455_s9] sm:$0xff]  ;;  %vm768_vm3 = vcmask 64512  }
  0xd6   : > { %1602 = vmatpush3.bf16.xpose.msra.mxu0 %v569_v2  ;;  %1610 = vmatpush3.bf16.xpose.msra.mxu1 %v639_v5  ;;  %v1796_v8 = vld [vmem:[#allocation12] sm:$0xff]   ;;  %v540_v9 = vpack.c.bf16 %v539_v7, %v539_v7  ;;  %v690_v14 = vpack.c.bf16 %v689_v13, %v689_v13  ;;  %v1799_v15 = vld [vmem:[%s2630_s5 + $0x8] sm:$0xff]   ;;  %v541_v17 = vld [vmem:[%s473_s28] sm:$0xff]  ;;  %s2107_s16 = smov 120   ;;  %s2704_s10 = sld [smem:[#allocation33_spill]]  ;;  %vm830_vm4 = vcmask 1043456  }
  0xd7   : > { %1603 = vmatprep.subr.bf16.mxu0 %v2105_v0  ;;  %1611 = vmatprep.subr.bf16.mxu1 %v2105_v0  ;;  %v717_v10 = vsel %vm564_vm1, %v1796_v8, 0  ;;  %v642_v16 = vsel %vm564_vm1, %v1799_v15, 0  ;;  %v542_v18 = vpack.c.bf16 %v541_v17, %v541_v17  ;;  %s2108_s12 = smov 112   ;;  %s2109_s29 = smov 104   ;;  %vm875_vm5 = vcmask 60416  }
  0xd8   : > { %s2705_s15 = sld [smem:[#allocation35_spill]]  ;;  %s2110_s8 = smov 8   ;;  %vm1006_vm6 = vcmask 126016   ;;  %vm1137_vm7 = vcmask 191616   ;;  %vm1268_vm8 = vcmask 257216  }
  0xd9   : > { %s2111_s9 = smov 16   ;;  %s2706_s27 = sld [smem:[#allocation24_spill]] }
  0xda   : > { %v1530_v19 = vld [vmem:[%s2703_s21] ss:$0 sm:$0xff]  ;;  %s2112_s14 = smov 24   ;;  %s2707_s23 = sld [smem:[#allocation36_spill]] }
  0xdb   : > { %s2708_s25 = sld [smem:[#allocation29_spill]]  ;;  %s533_s22 = scalar_lea.vmem [#allocation17], %s2437_s7 }
  0xdc   : > { %v1538_v29 = vld [vmem:[%s2704_s10] ss:$0 sm:$0xff]  ;;  %s1357_s17 = sshll.u32 %s533_s22, 4  ;;  %s1343_s13 = scalar_lea.sflag [#allocation8], %s2434_s3  ;;  %s2577_s17 = int_to_ptr.vmem [resolvable:$true] %s1357_s17 }
  0xdd   : > { %s2001_s7 = scalar_lea.vmem %s2577_s17, 128  ;;  %s2113_s10 = smov [#allocation17]  }
  0xde   : > { %1604 = vmatpush3.bf16.xpose.msra.mxu0 %v572_v6  ;;  %1612 = vmatpush3.bf16.xpose.msra.mxu1 %v642_v16  ;;  %v1534_v41 = vld [vmem:[%s2705_s15] ss:$0 sm:$0xff]  ;;  %p2002_p4 = scmp.ne.s32.totalorder %s2577_s17, %s2001_s7 }
  0xdf   : > { %1617 = vmatprep.subr.bf16.mxu0 %v2105_v0  ;;  %1625 = vmatprep.subr.bf16.mxu1 %v2105_v0  ;;  %s1567_s30 = sshll.u32 %s2706_s27, 7 }
  0xe1   : > { %p2710_p7 = scmp.ne.s32.totalorder %s2708_s25, 0 }
  0xe3   : > { %p2003_p3 = pnand %p2002_p4, %p2710_p7 }
  0xe5   : > { %1606 = vmatmul.mubr.msk.bf16.vlgmr.msra.gmra.mrb[0].mxu0 %vm564_vm1, %v540_v9  ;;  %1614 = vmatmul.mubr.msk.bf16.vlgmr.msra.gmra.mrb[0].mxu1 %vm564_vm1, %v542_v18  ;;  %p2004_p1 = pneg %p2003_p3 }
  0xe6   : > { %1618 = vmatpush3.bf16.xpose.msra.mxu0 %v717_v10  ;;  %1621 = vmatprep.mubr.msk.bf16.mxu0 %vm2106_vm0, %v2105_v0 }
  0xe7   : > { %1619 = vmatprep.subr.bf16.mxu0 %v2105_v0  ;;  %1627 = vmatprep.mubr.msk.bf16.mxu1 %vm2106_vm0, %v2105_v0 }
  0xee   : > { %1620 = vmatpush3.bf16.xpose.msra.mxu0 %v720_v12 }
  0xef   : > { %1649 = vmatprep.subr.bf16.mxu0 %v2105_v0 }
  0xf5   : > { %1622 = vmatmul.mubr.msk.bf16.vlgmr.msra.gmra.mrb[4].mxu0 %vm564_vm1, %v690_v14 }
  0xf6   : > { %1651 = vmatprep.mubr.msk.bf16.mxu0 %vm2106_vm0, %v2105_v0 }
 0x1b8   : > { %v608_v20 = vpop.f32.mrb[0].mxu0  ;;  %v678_v42 = vpop.f32.mrb[0].mxu1 }
 0x1b9   : > { %v609_v21 = vadd.f32 %v1530_v19, %v608_v20  ;;  %v1607_v22 = vpop.f32.mrb[1].mxu0  ;;  %v679_v43 = vadd.f32 %v1534_v41, %v678_v42  ;;  %v1615_v44 = vpop.f32.mrb[1].mxu1 }
 0x1ba   : > { %v611_v23 = vpop.f32.mrb[2].mxu0  ;;  %v681_v45 = vpop.f32.mrb[2].mxu1 }
 0x1bb   : > { %v684_v24 = vpack.c.bf16 %v609_v21, %v609_v21  ;;  %v1608_v25 = vpop.f32.mrb[3].mxu0  ;;  %v687_v46 = vpack.c.bf16 %v679_v43, %v679_v43  ;;  %v1616_v47 = vpop.f32.mrb[3].mxu1 }
 0x1bd   : > { %686 = vst.msk [vmem:[#allocation3] sm:$0xf] %vm685_vm2, %v684_v24  ;;  %688 = vst.msk [vmem:[#allocation4] sm:$0xf] %vm685_vm2, %v687_v46 }
 0x1c4   : > { %v766_v26 = vld [vmem:[#allocation3] sm:$0xf]  ;;  %v767_v48 = vld [vmem:[#allocation4] sm:$0xf] }
 0x1c5   : > { %v1800_v27 = vld [vmem:[#allocation3] ss:$0 sps:$4 sm:$0xff]   ;;  %v773_v28 = vsel %vm768_vm3, %v766_v26, 0  ;;  %v832_v49 = vsel %vm830_vm4, %v767_v48, 0  ;;  %v1806_v46 = vld [vmem:[#allocation4] ss:$0 sps:$4 sm:$0xff]  }
 0x1c6   : > { %1626 = vmatpush3.bf16.xpose.msra.mxu1 %v773_v28  ;;  %888 = vrot.lane.b32.xlu1 %v1800_v27, %s2107_s16  ;;  %v1803_v39 = vld [vmem:[#allocation3] ss:$0 sps:$4 sm:$0xff]   ;;  %v1807_v47 = vld [vmem:[#allocation4] ss:$0 sps:$4 sm:$0xff]  }
 0x1c7   : > { %1631 = vmatprep.subr.bf16.mxu1 %v2105_v0  ;;  %v1805_v60 = vld [vmem:[#allocation3] ss:$0 sps:$4 sm:$0xff]   ;;  %v1808_v48 = vld [vmem:[#allocation4] ss:$0 sps:$4 sm:$0xff]  }
 0x1c8   : > { %v756_v30 = vpop.f32.mrb[4].mxu0 }
 0x1c9   : > { %v757_v31 = vadd.f32 %v1538_v29, %v756_v30  ;;  %v1623_v32 = vpop.f32.mrb[5].mxu0 }
 0x1ca   : > { %v759_v33 = vpop.f32.mrb[6].mxu0 }
 0x1cb   : > { %v762_v34 = vpack.c.bf16 %v757_v31, %v757_v31  ;;  %v1624_v35 = vpop.f32.mrb[7].mxu0 }
 0x1cd   : > { %764 = vst.msk [vmem:[#allocation2] sm:$0xf] %vm685_vm2, %v762_v34 }
 0x1d4   : > { %v765_v36 = vld [vmem:[#allocation2] sm:$0xf] }
 0x1d5   : > { %v1801_v37 = vld [vmem:[#allocation2] ss:$0 sps:$4 sm:$0xff]   ;;  %1628 = vmatmul.mubr.msk.bf16.vlgmr.msra.gmra.mrb[4].mxu1 %vm768_vm3, %v765_v36 }
 0x1d6   : > { %883 = vrot.lane.b32.xlu1 %v1801_v37, %s2107_s16  ;;  %1633 = vmatprep.mubr.msk.bf16.mxu1 %vm2106_vm0, %v2105_v0  ;;  %v1802_v38 = vld [vmem:[#allocation2] ss:$0 sps:$4 sm:$0xff]  }
 0x1d7   : > { %v1804_v40 = vld [vmem:[#allocation2] ss:$0 sps:$4 sm:$0xff]   ;;  %1632 = vmatpush3.bf16.msra.mxu1 %v832_v49 }
 0x1d8   : > { %1637 = vmatprep.subr.bf16.mxu1 %v2105_v0 }
 0x1da   : > { %1014 = vrot.lane.b32.xlu1 %v1802_v38, %s2108_s12 }
 0x1de   : > { %1150 = vrot.lane.b32.xlu1 %v1803_v39, %s2109_s29 }
 0x1e2   : > { %1145 = vrot.lane.b32.xlu1 %v1804_v40, %s2109_s29 }
 0x238   : > { %v889_v61 = vpop.permute.xlu1 %888 }
 0x239   : > { %v894_v9 = vsel %vm768_vm3, %v889_v61, 0 }
 0x248   : > { %v884_v62 = vpop.permute.xlu1 %883 }
 0x24c   : > { %v1015_v1 = vpop.permute.xlu1 %1014 }
 0x250   : > { %v1151_v4 = vpop.permute.xlu1 %1150 }
 0x251   : > { %v1156_v7 = vsel %vm768_vm3, %v1151_v4, 0  ;;  %v1809_v4 = vld [vmem:[#allocation15] sm:$0xff]  }
 0x254   : > { %v1146_v10 = vpop.permute.xlu1 %1145 }
 0x2a8   : > { %v809_v50 = vpop.f32.mrb[4].mxu1 }
 0x2a9   : > { %v1629_v51 = vpop.f32.mrb[5].mxu1  ;;  %v815_v52 = vsel %vm768_vm3, %v809_v50, -inf }
 0x2aa   : > { %816 = vmax.xlane.f32.xlu0 %v815_v52  ;;  %v812_v53 = vpop.f32.mrb[6].mxu1 }
 0x2ab   : > { %v1630_v54 = vpop.f32.mrb[7].mxu1 }
 0x337   : > { %v817_v55 = vpop.xlane.xlu0 %816 }
 0x338   : > { %v818_v56 = vsub.f32 %v809_v50, %v817_v55 }
 0x33a   : > { %v819_v57 = vmul.f32 1.442695, %v818_v56 }
 0x33c   : > { %1811 = vpow2.f32 %v819_v57 }
 0x346   : > { %v1812_v58 = vpop.eup %1811 }
 0x347   : > { %v821_v59 = vsel %vm768_vm3, %v1812_v58, 0.0 }
 0x348   : > { %822 = vadd.xlane.f32.xlu0 %v821_v59 }
 0x35e   : > { %1019 = vrot.lane.b32.xlu0 %v1805_v60, %s2108_s12 }
 0x3d5   : > { %v823_v63 = vpop.xlane.xlu0 %822 }
 0x3d6   : > { %1813 = vrcp.f32 %v823_v63 }
 0x3d9   : > { %v1020_v2 = vpop.permute.xlu0 %1019 }
 0x3da   : > { %v1025_v3 = vsel %vm768_vm3, %v1020_v2, 0 }
 0x3db   : > { %1650 = vmatpush3.bf16.xpose.msra.mxu0 %v1025_v3 }
 0x3dc   : > { %1661 = vmatprep.subr.bf16.mxu0 %v2105_v0 }
 0x3e0   : > { %v1814_v5 = vpop.eup %1813 }
 0x3e1   : > { %v825_v6 = vmul.f32 %v1814_v5, %v1812_v58 }
 0x3e2   : > { %1652 = vmatmul.mubr.msk.bf16.vlgmr.msra.gmra.mrb[8].mxu0 %vm768_vm3, %v1015_v1 }
 0x3e3   : > { %1662 = vmatpush3.bf16.xpose.msra.mxu0 %v1156_v7  ;;  %v826_v8 = vpack.c.bf16 %v825_v6, %v825_v6  ;;  %1663 = vmatprep.mubr.msk.bf16.mxu0 %vm2106_vm0, %v2105_v0  ;;  %v1296_v6 = vsel %vm564_vm1, %v1809_v4, 0 }
 0x3e4   : > { %1673 = vmatprep.subr.bf16.mxu0 %v2105_v0 }
 0x3e5   : > { %1634 = vmatmul.mubr.msk.bf16.vlgmr.msra.gmra.mrb[8].mxu1 %vm768_vm3, %v826_v8 }
 0x3e6   : > { %1638 = vmatpush3.bf16.xpose.msra.mxu1 %v894_v9  ;;  %1639 = vmatprep.mubr.msk.bf16.mxu1 %vm2106_vm0, %v2105_v0 }
 0x3e7   : > { %1643 = vmatprep.subr.bf16.mxu1 %v2105_v0 }
 0x3ea   : > { %1664 = vmatmul.mubr.msk.bf16.vlgmr.msra.gmra.mrb[12].mxu0 %vm768_vm3, %v1146_v10 }
 0x3eb   : > { %1677 = vmatprep.mubr.msk.bf16.mxu0 %vm2106_vm0, %v2105_v0  ;;  %1674 = vmatpush3.bf16.xpose.msra.mxu0 %v1296_v6 }
 0x3ec   : > { %1675 = vmatprep.subr.bf16.mxu0 %v2105_v0 }
 0x3ed   : > { %1640 = vmatmul.mubr.msk.bf16.vlgmr.msra.gmra.mrb[12].mxu1 %vm768_vm3, %v884_v62 }
 0x3ee   : > { %1645 = vmatprep.mubr.msk.bf16.mxu1 %vm2106_vm0, %v2105_v0 }
 0x4b5   : > { %v1061_v11 = vpop.f32.mrb[8].mxu0 }
 0x4b6   : > { %v1653_v12 = vpop.f32.mrb[9].mxu0  ;;  %v1067_v13 = vsel %vm768_vm3, %v1061_v11, -inf }
 0x4b7   : > { %1068 = vmax.xlane.f32.xlu0 %v1067_v13  ;;  %v1064_v14 = vpop.f32.mrb[10].mxu0 }
 0x4b8   : > { %v868_v15 = vpop.f32.mrb[8].mxu1  ;;  %v1654_v16 = vpop.f32.mrb[11].mxu0 }
 0x4b9   : > { %v874_v17 = vpack.c.bf16 %v868_v15, %v868_v15  ;;  %v1635_v18 = vpop.f32.mrb[9].mxu1 }
 0x4ba   : > { %v871_v19 = vpop.f32.mrb[10].mxu1 }
 0x4bb   : > { %876 = vst.msk [vmem:[#allocation5] sm:$0xf] %vm875_vm5, %v874_v17  ;;  %v1636_v20 = vpop.f32.mrb[11].mxu1 }
 0x4bd   : > { %v1192_v21 = vpop.f32.mrb[12].mxu0 }
 0x4be   : > { %v1665_v22 = vpop.f32.mrb[13].mxu0  ;;  %v1198_v30 = vsel %vm768_vm3, %v1192_v21, -inf }
 0x4bf   : > { %v1195_v23 = vpop.f32.mrb[14].mxu0 }
 0x4c0   : > { %v930_v24 = vpop.f32.mrb[12].mxu1  ;;  %v1666_v25 = vpop.f32.mrb[15].mxu0 }
 0x4c1   : > { %v1641_v26 = vpop.f32.mrb[13].mxu1  ;;  %v936_v27 = vsel %vm768_vm3, %v930_v24, -inf }
 0x4c2   : > { %937 = vmax.xlane.f32.xlu1 %v936_v27  ;;  %v933_v28 = vpop.f32.mrb[14].mxu1  ;;  %v1562_v26 = vld [vmem:[%s2707_s23] ss:$0 sm:$0xff] }
 0x4c3   : > { %v1642_v29 = vpop.f32.mrb[15].mxu1 }
 0x4c6   : > { %1199 = vmax.xlane.f32.xlu1 %v1198_v30 }
 0x544   : > { %v1069_v31 = vpop.xlane.xlu0 %1068 }
 0x545   : > { %v1070_v32 = vsub.f32 %v1061_v11, %v1069_v31  ;;  %v1810_v11 = vld [vmem:[#allocation15 + $0x8] sm:$0xff]  }
 0x546   : > { %v1299_v13 = vsel %vm564_vm1, %v1810_v11, 0 }
 0x547   : > { %v1071_v33 = vmul.f32 1.442695, %v1070_v32  ;;  %1676 = vmatpush3.bf16.xpose.msra.mxu0 %v1299_v13 }
 0x549   : > { %1815 = vpow2.f32 %v1071_v33 }
 0x54f   : > { %v938_v34 = vpop.xlane.xlu1 %937 }
 0x550   : > { %v939_v35 = vsub.f32 %v930_v24, %v938_v34 }
 0x552   : > { %v940_v40 = vmul.f32 1.442695, %v939_v35 }
 0x553   : > { %v1816_v36 = vpop.eup %1815  ;;  %v1200_v37 = vpop.xlane.xlu1 %1199 }
 0x554   : > { %v1201_v38 = vsub.f32 %v1192_v21, %v1200_v37  ;;  %v1073_v39 = vsel %vm768_vm3, %v1816_v36, 0.0 }
 0x555   : > { %1074 = vadd.xlane.f32.xlu0 %v1073_v39 }
 0x556   : > { %v1202_v41 = vmul.f32 1.442695, %v1201_v38 }
 0x558   : > { %1817 = vpow2.f32 %v1202_v41 }
 0x559   : > { %1819 = vpow2.f32 %v940_v40 }
 0x562   : > { %v1818_v42 = vpop.eup %1817 }
 0x563   : > { %v1204_v43 = vsel %vm768_vm3, %v1818_v42, 0.0  ;;  %v1820_v44 = vpop.eup %1819 }
 0x564   : > { %1205 = vadd.xlane.f32.xlu1 %v1204_v43  ;;  %v942_v45 = vsel %vm768_vm3, %v1820_v44, 0.0 }
 0x568   : > { %943 = vadd.xlane.f32.xlu1 %v942_v45 }
 0x56b   : > { %951 = vrot.lane.b32.xlu0 %v1806_v46, %s2107_s16  ;;  %s2709_s16 = sld [smem:[#allocation37_spill]] }
 0x571   : > { %s2575_s11 = scalar_lea.hbm %s2709_s16, %s1567_s30 }
 0x579   : > { %1082 = vrot.lane.b32.xlu1 %v1807_v47, %s2108_s12  ;;  %s2005_s12 = sshll.u32 %s2113_s10, 4  ;;  %s2006_s12 = int_to_ptr.vmem [resolvable:$false] %s2005_s12 }
 0x57a   : > { %p2008_p13 = scmp.lt.s32.totalorder %s2577_s17, %s2006_s12 }
 0x57d   : > { %1213 = vrot.lane.b32.xlu1 %v1808_v48, %s2109_s29  ;;  %s2007_s29 = scalar_lea.vmem %s2006_s12, 256 }
 0x57e   : > { %p2009_p6 = scmp.lt.s32.totalorder %s2007_s29, %s2001_s7 }
 0x580   : > { %p2010_p0 = por %p2009_p6, %p2008_p13 }
 0x582   : > { %p2011_p12 = pnand %p2010_p0, %p2004_p1 }
 0x5e2   : > { %v1075_v49 = vpop.xlane.xlu0 %1074 }
 0x5e6   : > { %v952_v50 = vpop.permute.xlu0 %951 }
 0x5e7   : > { %v957_v51 = vsel %vm830_vm4, %v952_v50, 0 }
 0x5e8   : > { %1644 = vmatpush3.bf16.msra.mxu1 %v957_v51 }
 0x5e9   : > { %1655 = vmatprep.subr.bf16.mxu1 %v2105_v0 }
 0x5f1   : > { %v1206_v52 = vpop.xlane.xlu1 %1205 }
 0x5f5   : > { %v944_v53 = vpop.xlane.xlu1 %943 }
 0x5f6   : > { %1821 = vrcp.f32 %v944_v53 }
 0x5f7   : > { %1823 = vrcp.f32 %v1075_v49 }
 0x5f8   : > { %1825 = vrcp.f32 %v1206_v52 }
 0x5f9   : > { %v1083_v56 = vpop.permute.xlu1 %1082 }
 0x5fa   : > { %v1088_v59 = vsel %vm830_vm4, %v1083_v56, 0 }
 0x5fd   : > { %v1214_v61 = vpop.permute.xlu1 %1213 }
 0x5fe   : > { %v1219_v1 = vsel %vm830_vm4, %v1214_v61, 0 }
 0x600   : > { %v1822_v54 = vpop.eup %1821 }
 0x601   : > { %v946_v55 = vmul.f32 %v1822_v54, %v1820_v44  ;;  %v1824_v58 = vpop.eup %1823 }
 0x602   : > { %v1077_v60 = vmul.f32 %v1824_v58, %v1816_v36  ;;  %v1826_v63 = vpop.eup %1825 }
 0x603   : > { %v947_v57 = vpack.c.bf16 %v946_v55, %v946_v55  ;;  %v1208_v2 = vmul.f32 %v1826_v63, %v1818_v42 }
 0x604   : > { %v1078_v62 = vpack.c.bf16 %v1077_v60, %v1077_v60 }
 0x605   : > { %1646 = vmatmul.mubr.msk.bf16.vlgmr.msra.gmra.mrb[16].mxu1 %vm768_vm3, %v947_v57  ;;  %v1209_v3 = vpack.c.bf16 %v1208_v2, %v1208_v2 }
 0x606   : > { %1656 = vmatpush3.bf16.msra.mxu1 %v1088_v59  ;;  %1657 = vmatprep.mubr.msk.bf16.mxu1 %vm2106_vm0, %v2105_v0 }
 0x607   : > { %1667 = vmatprep.subr.bf16.mxu1 %v2105_v0 }
 0x60d   : > { %1658 = vmatmul.mubr.msk.bf16.vlgmr.msra.gmra.mrb[20].mxu1 %vm768_vm3, %v1078_v62 }
 0x60e   : > { %1668 = vmatpush3.bf16.msra.mxu1 %v1219_v1  ;;  %1669 = vmatprep.mubr.msk.bf16.mxu1 %vm2106_vm0, %v2105_v0 }
 0x615   : > { %1670 = vmatmul.mubr.msk.bf16.vlgmr.msra.gmra.mrb[24].mxu1 %vm768_vm3, %v1209_v3 }
 0x6d8   : > { %v993_v5 = vpop.f32.mrb[16].mxu1 }
 0x6d9   : > { %v1570_v7 = vpack.c.bf16 %v993_v5, %v993_v5  ;;  %v1647_v8 = vpop.f32.mrb[17].mxu1 }
 0x6da   : > { %v996_v9 = vpop.f32.mrb[18].mxu1 }
 0x6db   : > { %1003 = vrot.lane.b32.xlu0 %v1570_v7, %s2110_s8  ;;  %v1648_v10 = vpop.f32.mrb[19].mxu1 }
 0x6e0   : > { %v1124_v12 = vpop.f32.mrb[20].mxu1 }
 0x6e1   : > { %v1571_v14 = vpack.c.bf16 %v1124_v12, %v1124_v12  ;;  %v1659_v15 = vpop.f32.mrb[21].mxu1 }
 0x6e2   : > { %v1127_v16 = vpop.f32.mrb[22].mxu1 }
 0x6e3   : > { %1134 = vrot.lane.b32.xlu1 %v1571_v14, %s2111_s9  ;;  %v1660_v17 = vpop.f32.mrb[23].mxu1 }
 0x6e8   : > { %v1255_v18 = vpop.f32.mrb[24].mxu1 }
 0x6e9   : > { %v1572_v19 = vpack.c.bf16 %v1255_v18, %v1255_v18  ;;  %v1671_v20 = vpop.f32.mrb[25].mxu1 }
 0x6ea   : > { %v1258_v21 = vpop.f32.mrb[26].mxu1 }
 0x6eb   : > { %1265 = vrot.lane.b32.xlu0 %v1572_v19, %s2112_s14  ;;  %v1672_v0 = vpop.f32.mrb[27].mxu1 }
 0x74d   : > { %v1004_v22 = vpop.permute.xlu0 %1003 }
 0x74e   : > { %1007 = vst.msk [vmem:[#allocation5] sm:$0xf] %vm1006_vm6, %v1004_v22 }
 0x755   : > { %v1135_v23 = vpop.permute.xlu1 %1134 }
 0x756   : > { %1138 = vst.msk [vmem:[#allocation5] sm:$0xf] %vm1137_vm7, %v1135_v23 }
 0x75d   : > { %v1266_v24 = vpop.permute.xlu0 %1265 }
 0x75e   : > { %1269 = vst.msk [vmem:[#allocation5] sm:$0xf] %vm1268_vm8, %v1266_v24 }
 0x765   : > { %v1270_v25 = vld [vmem:[#allocation5] sm:$0xf] }
 0x766   : > { %1678 = vmatmul.mubr.msk.bf16.vlgmr.msra.gmra.mrb[16].mxu0 %vm564_vm1, %v1270_v25 }
 0x839   : > { %v1335_v27 = vpop.f32.mrb[16].mxu0 }
 0x83a   : > { %v1336_v28 = vadd.f32 %v1562_v26, %v1335_v27  ;;  %v1679_v29 = vpop.f32.mrb[17].mxu0 }
 0x83b   : > { %v1338_v30 = vpop.f32.mrb[18].mxu0 }
 0x83c   : > { %v1680_v31 = vpop.f32.mrb[19].mxu0  ;;  %1341 = vst.msk [vmem:[%s533_s22] sm:$0xff] %vm564_vm1, %v1336_v28 }
 0x83d   : > { %2014 = shalt.err (!%p2011_p12)
}
 0x83e   : > { %s2015_s3 = scalar_lea.hbm %s2575_s11, 128  ;;  %s2019_s15 = scalar_lea.hbm %s2709_s16, 256 }
 0x83f   : > { %p2016_p8 = scmp.ne.s32.totalorder %s2575_s11, %s2015_s3  ;;  %p2020_p5 = scmp.lt.u32.totalorder %s2575_s11, %s2709_s16 }
 0x840   : > { %p2021_p9 = scmp.lt.u32.totalorder %s2019_s15, %s2015_s3  ;;  %p2023_p4 = scmp.lt.u32.totalorder %s2015_s3, %s2575_s11 }
 0x841   : > { %p2017_p11 = pnand %p2016_p8, %p2710_p7 }
 0x842   : > { %p2022_p2 = por %p2021_p9, %p2020_p5 }
 0x843   : > { %p2018_p10 = pneg %p2017_p11 }
 0x844   : > { %p2024_p3 = por %p2023_p4, %p2022_p2 }
 0x846   : > { %p2025_p1 = pnand %p2024_p3, %p2018_p10 }
 0x848   : > { %2028 = shalt.err (!%p2025_p1)
}
 0x849   : > { %1699 = dma.vmem_to_hbm [thread:$0]  (%p2710_p7), %s2577_s17, 128, %s2575_s11, %s1343_s13  }
 0x84a PF: > { %s2711_s27 = sld [smem:[#allocation23_spill]]  ;;  %s2712_s14 = sld [smem:[#allocation27_spill]] }
 0x84b   : > { %s2713_s24 = sld [smem:[#allocation26_spill]] }
 0x850   : > { %s1369_s28 = sand.u32 1, %s2711_s27   ;;  %p2714_p13 = scmp.ne.s32.totalorder %s2712_s14, 0 }
 0x851   : > { %p2715_p6 = scmp.ge.s32.totalorder %s2713_s24, 2  ;;  %s1370_s23 = scalar_lea.sflag [#allocation8], %s1369_s28 }
 0x853   : > { %p1722_p0 = pnand %p2715_p6, %p2714_p13 }
 0x855   : > { %2070 = dma.done.wait (!%p1722_p0), %s1370_s23, 128  }
 0x856   : > { %2072 = vsyncadd (!%p1722_p0), %s1370_s23, 4294967168  ;;  %s32_s22 = sadd.s32 1, %s2713_s24   ;;  %s2716_s25 = sld [smem:[#allocation30_spill]] }
 0x857   : > { %p29_p12 = scmp.ge.s32.totalorder %s32_s22, 4   ;;  %s2717_s20 = sld [smem:[#allocation25_spill]] }
 0x858   : > { %s2718_s21 = sld [smem:[#allocation28_spill]]  ;;  %s2719_s17 = smov %s2079_s18 }
 0x859   : > { %s2720_s18 = smov %s2083_s19  ;;  %31 = sbr.rel (!%p29_p12) target bundleno = 18 (0x12), region = 149 }
 0x85c   : > { %s2721_s19 = smov %s2716_s25 }
 0x860   :  { %1375 = vsyncpa [#allocation7], 1 }
 0x861   :  { %1377 = vsyncpa [#allocation7 + $0x1], 1 }
 0x862   :  { %1378 = vsyncpa [#allocation10], 1 }
 0x863   :  { %1380 = vsyncpa [#allocation10 + $0x1], 1 }
 0x864   :  { %1381 = vsyncpa [#allocation13], 1 }
 0x865   :  { %1382 = vsyncpa [#allocation16], 1 }
 0x866   :  { %1383 = vsyncpa [#allocation8], 1 }
 0x867   :  { %1385 = vsyncpa [#allocation8 + $0x1], 1 }

// kernel: tpu_custom_call.1
= control target key start
LH: loop header
LB: loop body
LE: loop exit
PB: predicated region body
PF: predicated region fallthrough
CT: control target
= control target key end

     0   :  { %s2625_s0 = inlined_call_operand.hbm [shape: f32[2,8,32], index: 0, kind: input, shape index: {}]   ;;  %s2626_s1 = inlined_call_operand.hbm [shape: f32[2,8,32], index: 1, kind: input, shape index: {}]   ;;  %s2627_s2 = inlined_call_operand.hbm [shape: f32[2,8,32], index: 2, kind: input, shape index: {}]   ;;  %s2628_s3 = inlined_call_operand.hbm [shape: bf16[32,32], index: 3, kind: input, shape index: {}]   ;;  %s2629_s4 = inlined_call_operand.hbm [shape: bf16[32,32], index: 4, kind: input, shape index: {}]   ;;  %s2630_s5 = inlined_call_operand.vmem [shape: bf16[32,32], index: 5, kind: input, shape index: {}]   ;;  %s2631_s6 = inlined_call_operand.hbm [shape: bf16[32,32], index: 6, kind: input, shape index: {}]   ;;  %s2632_s7 = inlined_call_operand.vmem [shape: f32[1,32], index: 7, kind: input, shape index: {}]   ;;  %s2633_s8 = inlined_call_operand.vmem [shape: f32[1,32], index: 8, kind: input, shape index: {}]   ;;  %s2634_s9 = inlined_call_operand.vmem [shape: f32[1,32], index: 9, kind: input, shape index: {}]   ;;  %s2635_s10 = inlined_call_operand.vmem [shape: f32[1,32], index: 10, kind: input, shape index: {}]   ;;  %s2636_s11 = inlined_call_operand.hbm [shape: f32[2,8,32], index: 11, kind: output, shape index: {}]  }
   0x1   :  { %2663 = sst [smem:[#allocation31_spill]] %s2626_s1 }
   0x2   :  { %2664 = sst [smem:[#allocation32_spill]] %s2628_s3 }
   0x3   :  { %2665 = sst [smem:[#allocation33_spill]] %s2632_s7 }
   0x4   :  { %2666 = sst [smem:[#allocation34_spill]] %s2633_s8 }
   0x5   :  { %2667 = sst [smem:[#allocation35_spill]] %s2634_s9 }
   0x6   :  { %2668 = sst [smem:[#allocation36_spill]] %s2635_s10 }
   0x7   :  { %2669 = sst [smem:[#allocation37_spill]] %s2636_s11 }
   0x8   :  { %16 = vsyncpa [#allocation7], 0 }
   0x9   :  { %18 = vsyncpa [#allocation7 + $0x1], 0 }
   0xa   :  { %19 = vsyncpa [#allocation10], 0 }
   0xb   :  { %21 = vsyncpa [#allocation10 + $0x1], 0 }
   0xc   :  { %22 = vsyncpa [#allocation13], 0 }
   0xd   :  { %23 = vsyncpa [#allocation16], 0 }
   0xe   :  { %24 = vsyncpa [#allocation8], 0 }
   0xf   :  { %26 = vsyncpa [#allocation8 + $0x1], 0  ;;  %s2174_s17 = smov 0   ;;  %s2176_s18 = smov 0  }
  0x10   :  { %s2178_s19 = smov 0   ;;  %s2180_s20 = smov 0  }
  0x11   :  { %s2182_s21 = smov 0   ;;  %s2184_s22 = smov 0  }
  0x12 LB: > { %2670 = sst [smem:[#allocation23_spill]] %s2075_s17  ;;  %s2205_s23 = sadd.s32 4294967295, %s2095_s22   ;;  %s2095_s22 = sphi %s2184_s22, %s32_s22   ;;  %s2091_s21 = sphi %s2182_s21, %s2718_s21   ;;  %s2087_s20 = sphi %s2180_s20, %s2717_s20   ;;  %s2083_s19 = sphi %s2178_s19, %s2721_s19   ;;  %s2079_s18 = sphi %s2176_s18, %s2720_s18   ;;  %s2075_s17 = sphi %s2174_s17, %s2719_s17  }
  0x13   : > { %2671 = sst [smem:[#allocation24_spill]] %s2087_s20  ;;  %s1510_s24 = sadd.s32 4294967294, %s2095_s22  }
  0x14   : > { %2672 = sst [smem:[#allocation25_spill]] %s2091_s21  ;;  %p66_p0 = scmp.ne.s32.totalorder %s2079_s18, %s2075_s17 }
  0x15   : > { %2673 = sst [smem:[#allocation26_spill]] %s2095_s22  ;;  %p2639_p1 = scmp.eq.s32.totalorder %s2205_s23, 0 }
  0x16   : > { %p318_p3 = scmp.eq.s32.totalorder %s1510_s24, 1  ;;  %p1511_p5 = scmp.ge.s32.totalorder %s2095_s22, 1 }
  0x17   : > { %p2214_p4 = por %p2639_p1, %p66_p0  ;;  %p325_p7 = scmp.lt.s32.totalorder %s2095_s22, 3 }
  0x18   : > { %p2219_p6 = por %p318_p3, %p66_p0  ;;  %s2097_s28 = smov [#allocation12]  }
  0x19   : > { %s2674_s25 = scalar_select %p2214_p4, 1, 0 }
  0x1a   : > { %s2675_s26 = scalar_select %p2219_p6, 1, 0 }
  0x1b   : > { %p2224_p8 = pnand %p1511_p5, %p325_p7  ;;  %s337_s29 = sshll.u32 %s2097_s28, 4  ;;  %s338_s29 = int_to_ptr.vmem [resolvable:$true] %s337_s29 }
  0x1c   : > { %2676 = sst [smem:[#allocation27_spill]] %s2675_s26  ;;  %s44_s12 = sadd.s32 1, %s2091_s21 }
  0x1d   : > { %s2677_s27 = scalar_select %p2224_p8, 1, 0 }
  0x1e   : > { %p1701_p9 = pneg %p2224_p8  ;;  %s2679_s3 = sld [smem:[#allocation32_spill]] }
  0x20   : > { %p2233_p11 = pnand %p1701_p9, %p2639_p1 }
  0x22   : > { %s2678_s30 = scalar_select %p2233_p11, 1, 0 }
  0x23   : > { %p2246_p13 = pneg %p2233_p11 }
  0x24   : > { %s1827_s15 = scalar_lea.hbm %s2679_s3, 256 }
  0x25   : > { %p1828_p12 = scmp.ne.s32.totalorder %s2679_s3, %s1827_s15  ;;  %p1834_p5 = scmp.lt.u32.totalorder %s1827_s15, %s2679_s3 }
  0x26   : > { %s2680_s28 = scalar_select %p2246_p13, 1, 0 }
  0x27   : > { %p1830_p0 = pnand %p2246_p13, %p1828_p12 }
  0x29   : > { %p1831_p3 = pneg %p1830_p0 }
  0x2b   : > { %p1836_p7 = pnand %p1834_p5, %p1831_p3 }
  0x2d   : > { %1839 = shalt.err (!%p1836_p7)
}
  0x2e   : > { %s1840_s13 = scalar_lea.vmem %s338_s29, 256  ;;  %p1848_p2 = scmp.lt.s32.totalorder %s338_s29, %s338_s29 }
  0x2f   : > { %p1841_p9 = scmp.ne.s32.totalorder %s338_s29, %s1840_s13  ;;  %p1849_p6 = scmp.lt.s32.totalorder %s1840_s13, %s1840_s13 }
  0x31   : > { %p1843_p10 = pnand %p1841_p9, %p2246_p13  ;;  %p1850_p4 = por %p1849_p6, %p1848_p2 }
  0x33   : > { %p1844_p1 = pneg %p1843_p10 }
  0x35   : > { %p1851_p8 = pnand %p1850_p4, %p1844_p1 }
  0x37   : > { %1854 = shalt.err (!%p1851_p8)
}
  0x38   : > { %s2643_s14 = smov 64   ;;  %s2645_s17 = smov 4  }
  0x39   : > { %1704 = dma.hbm_to_vmem [thread:$0]  (!%p2233_p11), %s2679_s3, 256, %s338_s29, [#allocation13], %s2643_s14, %s2643_s14, %s2645_s17  }
  0x3a   : > { %p46_p1 = scmp.ge.s32.totalorder %s44_s12, 2  ;;  %s53_s16 = sadd.s32 1, %s2083_s19 }
  0x3b   : > { %p60_p2 = scmp.ne.s32.totalorder %s2083_s19, %s2079_s18  ;;  %p61_p4 = scmp.eq.s32.totalorder %s2095_s22, 0 }
  0x3c   : > { %s2723_s12 = smov (%p46_p1, %s44_s12), 0  ;;  %p2682_p8 = scmp.eq.s32.totalorder %s2205_s23, 1 }
  0x3d   : > { %2681 = sst [smem:[#allocation28_spill]] %s2723_s12  ;;  %p62_p6 = por %p61_p4, %p60_p2 }
  0x3e   : > { %p2273_p10 = por %p2682_p8, %p60_p2  ;;  %s48_s13 = ssub.s32 %s2091_s21, %s2723_s12 }
  0x3f   : > { %p1728_p12 = scmp.lt.s32.totalorder %s2095_s22, 2  ;;  %p51_p0 = scmp.eq.s32.totalorder %s48_s13, 0 }
  0x40   : > { %s2683_s24 = scalar_select %p2273_p10, 1, 0 }
  0x41   : > { %s2648_s11 = sand.u32 1, %s2083_s19   ;;  %s2286_s26 = sshll.u32 %s2091_s21, 7 }
  0x42   : > { %2684 = sst [smem:[#allocation29_spill]] %s2683_s24  ;;  %s2283_s29 = sshll.u32 %s2648_s11, 3 }
  0x43   : > { %s2289_s15 = scalar_select %p51_p0, %s2083_s19, %s53_s16  }
  0x44   : > { %p2291_p3 = pnand %p1728_p12, %p62_p6  ;;  %s411_s17 = sand.u32 1, %s2095_s22  }
  0x45   : > { %2685 = sst [smem:[#allocation30_spill]] %s2289_s15  ;;  %s2687_s1 = sld [smem:[#allocation31_spill]] }
  0x46   : > { %s2686_s14 = scalar_select %p2291_p3, 1, 0 }
  0x47   : > { %s415_s11 = scalar_lea.vmem [#allocation9], %s2283_s29  ;;  %s2100_s16 = smov [#allocation14]  }
  0x48   : > { %s422_s21 = sshll.u32 %s415_s11, 4  ;;  %s2305_s15 = sshll.u32 %s2100_s16, 4  ;;  %s2303_s21 = int_to_ptr.vmem [resolvable:$true] %s422_s21  ;;  %s351_s15 = int_to_ptr.vmem [resolvable:$true] %s2305_s15 }
  0x49   : > { %s2307_s24 = scalar_lea.sflag [#allocation10], %s411_s17  ;;  %p2313_p7 = pneg %p2291_p3 }
  0x4b   : > { %s2300_s13 = scalar_lea.hbm %s2687_s1, %s2286_s26  ;;  %s1860_s22 = scalar_lea.hbm %s2687_s1, 256 }
  0x4c   : > { %s1855_s10 = scalar_lea.hbm %s2300_s13, 128  ;;  %p1861_p2 = scmp.lt.u32.totalorder %s2300_s13, %s2687_s1 }
  0x4d   : > { %p1856_p5 = scmp.ne.s32.totalorder %s2300_s13, %s1855_s10  ;;  %p1862_p4 = scmp.lt.u32.totalorder %s1860_s22, %s1855_s10 }
  0x4e   : > { %s2688_s3 = scalar_select %p2313_p7, 1, 0 }
  0x4f   : > { %p1858_p9 = pnand %p2313_p7, %p1856_p5  ;;  %p1863_p6 = por %p1862_p4, %p1861_p2 }
  0x50   : > { %p1864_p8 = scmp.lt.u32.totalorder %s1855_s10, %s2300_s13 }
  0x51   : > { %p1859_p1 = pneg %p1858_p9 }
  0x52   : > { %p1865_p12 = por %p1864_p8, %p1863_p6 }
  0x54   : > { %p1866_p0 = pnand %p1865_p12, %p1859_p1 }
  0x56   : > { %1869 = shalt.err (!%p1866_p0)
}
  0x57   : > { %s1870_s17 = scalar_lea.vmem %s2303_s21, 128  ;;  %s2101_s12 = smov [#allocation9]  }
  0x58   : > { %p1871_p5 = scmp.ne.s32.totalorder %s2303_s21, %s1870_s17  ;;  %s1875_s11 = sshll.u32 %s2101_s12, 4  ;;  %s1876_s11 = int_to_ptr.vmem [resolvable:$false] %s1875_s11 }
  0x59   : > { %s1877_s20 = scalar_lea.vmem %s1876_s11, 256  ;;  %p1878_p11 = scmp.lt.s32.totalorder %s2303_s21, %s1876_s11 }
  0x5a   : > { %p1873_p9 = pnand %p1871_p5, %p2313_p7  ;;  %p1879_p13 = scmp.lt.s32.totalorder %s1877_s20, %s1870_s17 }
  0x5c   : > { %p1874_p10 = pneg %p1873_p9  ;;  %p1880_p2 = por %p1879_p13, %p1878_p11 }
  0x5e   : > { %p1881_p4 = pnand %p1880_p2, %p1874_p10 }
  0x60   : > { %1884 = shalt.err (!%p1881_p4)
}
  0x61   : > { %1717 = dma.hbm_to_vmem [thread:$0]  (!%p2291_p3), %s2300_s13, 128, %s2303_s21, %s2307_s24  }
  0x62   : > { %s1885_s16 = scalar_lea.hbm %s2629_s4, 256  ;;  %p2689_p11 = scmp.ne.s32.totalorder %s2680_s28, 0 }
  0x63   : > { %p1886_p1 = scmp.ne.s32.totalorder %s2629_s4, %s1885_s16  ;;  %p1892_p6 = scmp.lt.u32.totalorder %s1885_s16, %s2629_s4 }
  0x65   : > { %p1888_p13 = pnand %p1886_p1, %p2689_p11 }
  0x67   : > { %p1889_p10 = pneg %p1888_p13 }
  0x69   : > { %p1894_p8 = pnand %p1892_p6, %p1889_p10 }
  0x6b   : > { %1897 = shalt.err (!%p1894_p8)
}
  0x6c   : > { %s1898_s20 = scalar_lea.vmem %s351_s15, 256  ;;  %p1906_p9 = scmp.lt.s32.totalorder %s351_s15, %s351_s15 }
  0x6d   : > { %p1899_p12 = scmp.ne.s32.totalorder %s351_s15, %s1898_s20  ;;  %p1907_p2 = scmp.lt.s32.totalorder %s1898_s20, %s1898_s20 }
  0x6f   : > { %p1901_p0 = pnand %p1899_p12, %p2689_p11  ;;  %p1908_p4 = por %p1907_p2, %p1906_p9 }
  0x71   : > { %p1902_p5 = pneg %p1901_p0 }
  0x73   : > { %p1909_p3 = pnand %p1908_p4, %p1902_p5 }
  0x75   : > { %1912 = shalt.err (!%p1909_p3)
}
  0x76   : > { %p2690_p1 = scmp.ne.s32.totalorder %s2678_s30, 0  ;;  %s2691_s1 = smov 4  }
  0x77   : > { %s2692_s21 = smov 64   ;;  %s2102_s22 = smov [#allocation15]  }
  0x78   : > { %1707 = dma.hbm_to_vmem [thread:$0]  (!%p2690_p1), %s2629_s4, 256, %s351_s15, [#allocation13], %s2692_s21, %s2692_s21, %s2691_s1  }
  0x79   : > { %s366_s16 = sshll.u32 %s2102_s22, 4  ;;  %s1913_s11 = scalar_lea.hbm %s2631_s6, 256  ;;  %s367_s16 = int_to_ptr.vmem [resolvable:$true] %s366_s16 }
  0x7a   : > { %p1914_p3 = scmp.ne.s32.totalorder %s2631_s6, %s1913_s11  ;;  %p1920_p6 = scmp.lt.u32.totalorder %s1913_s11, %s2631_s6 }
  0x7c   : > { %p1916_p13 = pnand %p1914_p3, %p2689_p11 }
  0x7e   : > { %p1917_p10 = pneg %p1916_p13 }
  0x80   : > { %p1922_p8 = pnand %p1920_p6, %p1917_p10 }
  0x82   : > { %1925 = shalt.err (!%p1922_p8)
}
  0x83   : > { %s1926_s15 = scalar_lea.vmem %s367_s16, 256  ;;  %p1934_p9 = scmp.lt.s32.totalorder %s367_s16, %s367_s16 }
  0x84   : > { %p1927_p12 = scmp.ne.s32.totalorder %s367_s16, %s1926_s15  ;;  %p1935_p2 = scmp.lt.s32.totalorder %s1926_s15, %s1926_s15 }
  0x86   : > { %p1929_p0 = pnand %p1927_p12, %p2689_p11  ;;  %p1936_p4 = por %p1935_p2, %p1934_p9 }
  0x88   : > { %p1930_p5 = pneg %p1929_p0 }
  0x8a   : > { %p1937_p7 = pnand %p1936_p4, %p1930_p5 }
  0x8c   : > { %1940 = shalt.err (!%p1937_p7)
}
  0x8d   : > { %1710 = dma.hbm_to_vmem [thread:$0]  (!%p2690_p1), %s2631_s6, 256, %s367_s16, [#allocation16], %s2692_s21, %s2692_s21, %s2691_s1  }
  0x8e   : > { %s2384_s13 = scalar_lea.hbm %s2625_s0, %s2286_s26  ;;  %s396_s30 = scalar_lea.vmem [#allocation6], %s2283_s29 }
  0x8f   : > { %s404_s10 = sshll.u32 %s396_s30, 4  ;;  %s2693_s22 = sand.u32 1, %s2083_s19   ;;  %s405_s10 = int_to_ptr.vmem [resolvable:$true] %s404_s10 }
  0x90   : > { %s393_s12 = scalar_lea.sflag [#allocation7], %s2693_s22  ;;  %s1941_s17 = scalar_lea.hbm %s2384_s13, 128 }
  0x91   : > { %p1942_p7 = scmp.ne.s32.totalorder %s2384_s13, %s1941_s17  ;;  %p2694_p11 = scmp.ne.s32.totalorder %s2688_s3, 0 }
  0x92   : > { %s1946_s16 = scalar_lea.hbm %s2625_s0, 256  ;;  %p1947_p1 = scmp.lt.u32.totalorder %s2384_s13, %s2625_s0 }
  0x93   : > { %p1944_p3 = pnand %p1942_p7, %p2694_p11  ;;  %p1948_p10 = scmp.lt.u32.totalorder %s1946_s16, %s1941_s17 }
  0x94   : > { %p1950_p8 = scmp.lt.u32.totalorder %s1941_s17, %s2384_s13 }
  0x95   : > { %p1945_p13 = pneg %p1944_p3  ;;  %p1949_p6 = por %p1948_p10, %p1947_p1 }
  0x97   : > { %p1951_p12 = por %p1950_p8, %p1949_p6 }
  0x99   : > { %p1952_p0 = pnand %p1951_p12, %p1945_p13 }
  0x9b   : > { %1955 = shalt.err (!%p1952_p0)
}
  0x9c   : > { %s1956_s15 = scalar_lea.vmem %s405_s10, 128  ;;  %s2103_s7 = smov [#allocation6]  }
  0x9d   : > { %p1957_p5 = scmp.ne.s32.totalorder %s405_s10, %s1956_s15  ;;  %s1961_s8 = sshll.u32 %s2103_s7, 4  ;;  %s1962_s8 = int_to_ptr.vmem [resolvable:$false] %s1961_s8 }
  0x9e   : > { %s1963_s9 = scalar_lea.vmem %s1962_s8, 256  ;;  %p1964_p4 = scmp.lt.s32.totalorder %s405_s10, %s1962_s8 }
  0x9f   : > { %p1959_p9 = pnand %p1957_p5, %p2694_p11  ;;  %p1965_p7 = scmp.lt.s32.totalorder %s1963_s9, %s1956_s15 }
  0xa1   : > { %p1960_p2 = pneg %p1959_p9  ;;  %p1966_p3 = por %p1965_p7, %p1964_p4 }
  0xa3   : > { %p1967_p1 = pnand %p1966_p3, %p1960_p2 }
  0xa5   : > { %1970 = shalt.err (!%p1967_p1)
}
  0xa6   : > { %p2695_p10 = scmp.ne.s32.totalorder %s2686_s14, 0  ;;  %s2410_s22 = scalar_lea.hbm %s2627_s2, %s2286_s26 }
  0xa7   : > { %s433_s17 = scalar_lea.vmem [#allocation11], %s2283_s29  ;;  %s1971_s21 = scalar_lea.hbm %s2410_s22, 128 }
  0xa8   : > { %1714 = dma.hbm_to_vmem [thread:$0]  (!%p2695_p10), %s2384_s13, 128, %s405_s10, %s393_s12  }
  0xa9   : > { %s440_s1 = sshll.u32 %s433_s17, 4  ;;  %p1972_p13 = scmp.ne.s32.totalorder %s2410_s22, %s1971_s21  ;;  %s441_s1 = int_to_ptr.vmem [resolvable:$true] %s440_s1 }
  0xaa   : > { %s1976_s13 = scalar_lea.hbm %s2627_s2, 256  ;;  %p1977_p12 = scmp.lt.u32.totalorder %s2410_s22, %s2627_s2 }
  0xab   : > { %p1974_p6 = pnand %p1972_p13, %p2694_p11  ;;  %p1978_p0 = scmp.lt.u32.totalorder %s1976_s13, %s1971_s21 }
  0xac   : > { %p1980_p9 = scmp.lt.u32.totalorder %s1971_s21, %s2410_s22 }
  0xad   : > { %p1975_p8 = pneg %p1974_p6  ;;  %p1979_p5 = por %p1978_p0, %p1977_p12 }
  0xaf   : > { %p1981_p2 = por %p1980_p9, %p1979_p5 }
  0xb1   : > { %p1982_p4 = pnand %p1981_p2, %p1975_p8 }
  0xb3   : > { %1985 = shalt.err (!%p1982_p4)
}
  0xb4   : > { %s1986_s29 = scalar_lea.vmem %s441_s1, 128  ;;  %s2104_s26 = smov [#allocation11]  }
  0xb5   : > { %p1987_p7 = scmp.ne.s32.totalorder %s441_s1, %s1986_s29  ;;  %s1991_s20 = sshll.u32 %s2104_s26, 4  ;;  %s1992_s20 = int_to_ptr.vmem [resolvable:$false] %s1991_s20 }
  0xb6   : > { %s1993_s15 = scalar_lea.vmem %s1992_s20, 256  ;;  %p1994_p13 = scmp.lt.s32.totalorder %s441_s1, %s1992_s20 }
  0xb7   : > { %p1989_p3 = pnand %p1987_p7, %p2694_p11  ;;  %p1995_p6 = scmp.lt.s32.totalorder %s1993_s15, %s1986_s29 }
  0xb9   : > { %p1990_p1 = pneg %p1989_p3  ;;  %p1996_p10 = por %p1995_p6, %p1994_p13 }
  0xbb   : > { %p1997_p0 = pnand %p1996_p10, %p1990_p1 }
  0xbd   : > { %2000 = shalt.err (!%p1997_p0)
}
  0xbe   : > { %p2696_p12 = scmp.ne.s32.totalorder %s2686_s14, 0  ;;  %p2697_p8 = scmp.ne.s32.totalorder %s2677_s27, 0 }
  0xbf   : > { %s2434_s3 = sand.u32 (!%p2697_p8), 1, %s2079_s18   ;;  %p2698_p11 = scmp.ne.s32.totalorder (!%p2697_p8), %s2674_s25, 0 }
  0xc0   : > { %1720 = dma.hbm_to_vmem [thread:$0]  (!%p2696_p12), %s2410_s22, 128, %s441_s1, %s2307_s24  }
  0xc1   : > { %449 = sbr.rel (%p2697_p8) target bundleno = 2122 (0x84a), region = 64  ;;  %s2437_s7 = sshll.u32 (!%p2697_p8), %s2434_s3, 3 }
  0xc2   : > { %s452_s8 = scalar_lea.sflag (!%p2697_p8), [#allocation7], %s2434_s3  ;;  %s455_s9 = scalar_lea.vmem (!%p2697_p8), [#allocation6], %s2437_s7 }
  0xc8   : > { %2054 = dma.done.wait (%p2698_p11), %s452_s8, 128  }
  0xc9   : > { %2056 = vsyncadd (%p2698_p11), %s452_s8, 4294967168  ;;  %s460_s27 = sand.u32 1, %s2205_s23   ;;  %s464_s24 = scalar_lea.vmem [#allocation9], %s2437_s7 }
  0xca   : > { %s461_s14 = scalar_lea.sflag [#allocation10], %s460_s27 }
  0xcb   : > { %2058 = dma.done.wait (%p2698_p11), %s461_s14, 256  }
  0xcc   : > { %2060 = vsyncadd (%p2698_p11), %s461_s14, 4294967040  ;;  %s473_s28 = scalar_lea.vmem [#allocation11], %s2437_s7  ;;  %p2699_p10 = scmp.eq.s32.totalorder %s2205_s23, 0 }
  0xce   : > { %2062 = dma.done.wait (%p2699_p10), [#allocation13], 512   ;;  %p2700_p5 = pmov %p2699_p10 }
  0xd0   : > { %2064 = vsyncadd (%p2700_p5), [#allocation13], 4294966784  ;;  %p2701_p9 = pmov %p2700_p5 }
  0xd1   : > { %p2702_p2 = pmov %p2700_p5 }
  0xd2   : > { %2066 = dma.done.wait (%p2701_p9), [#allocation16], 256  }
  0xd3   : > { %2068 = vsyncadd (%p2702_p2), [#allocation16], 4294967040  ;;  %v2105_v0 = vmov 0.0   ;;  %vm2106_vm0 = vmmov 0   ;;  %vm564_vm1 = vcmask 261120   ;;  %v1794_v1 = vld [vmem:[#allocation14] sm:$0xff]  }
  0xd4   : > { %1601 = vmatprep.subr.bf16.mxu0 %v2105_v0  ;;  %1605 = vmatprep.mubr.msk.bf16.mxu0 %vm2106_vm0, %v2105_v0  ;;  %v569_v2 = vsel %vm564_vm1, %v1794_v1, 0  ;;  %v1795_v3 = vld [vmem:[#allocation14 + $0x8] sm:$0xff]   ;;  %v1798_v4 = vld [vmem:[%s2630_s5] sm:$0xff]   ;;  %v1797_v11 = vld [vmem:[#allocation12 + $0x8] sm:$0xff]   ;;  %s2703_s21 = sld [smem:[#allocation34_spill]]  ;;  %vm685_vm2 = vcmask 257024  }
  0xd5   : > { %1609 = vmatprep.subr.bf16.mxu1 %v2105_v0  ;;  %1613 = vmatprep.mubr.msk.bf16.mxu1 %vm2106_vm0, %v2105_v0  ;;  %v639_v5 = vsel %vm564_vm1, %v1798_v4, 0  ;;  %v572_v6 = vsel %vm564_vm1, %v1795_v3, 0  ;;  %v539_v7 = vld [vmem:[%s464_s24] sm:$0xff]  ;;  %v720_v12 = vsel %vm564_vm1, %v1797_v11, 0  ;;  %v689_v13 = vld [vmem:[%s455_s9] sm:$0xff]  ;;  %vm768_vm3 = vcmask 64512  }
  0xd6   : > { %1602 = vmatpush3.bf16.xpose.msra.mxu0 %v569_v2  ;;  %1610 = vmatpush3.bf16.xpose.msra.mxu1 %v639_v5  ;;  %v1796_v8 = vld [vmem:[#allocation12] sm:$0xff]   ;;  %v540_v9 = vpack.c.bf16 %v539_v7, %v539_v7  ;;  %v690_v14 = vpack.c.bf16 %v689_v13, %v689_v13  ;;  %v1799_v15 = vld [vmem:[%s2630_s5 + $0x8] sm:$0xff]   ;;  %v541_v17 = vld [vmem:[%s473_s28] sm:$0xff]  ;;  %s2107_s16 = smov 120   ;;  %s2704_s10 = sld [smem:[#allocation33_spill]]  ;;  %vm830_vm4 = vcmask 1043456  }
  0xd7   : > { %1603 = vmatprep.subr.bf16.mxu0 %v2105_v0  ;;  %1611 = vmatprep.subr.bf16.mxu1 %v2105_v0  ;;  %v717_v10 = vsel %vm564_vm1, %v1796_v8, 0  ;;  %v642_v16 = vsel %vm564_vm1, %v1799_v15, 0  ;;  %v542_v18 = vpack.c.bf16 %v541_v17, %v541_v17  ;;  %s2108_s12 = smov 112   ;;  %s2109_s29 = smov 104   ;;  %vm875_vm5 = vcmask 60416  }
  0xd8   : > { %s2705_s15 = sld [smem:[#allocation35_spill]]  ;;  %s2110_s8 = smov 8   ;;  %vm1006_vm6 = vcmask 126016   ;;  %vm1137_vm7 = vcmask 191616   ;;  %vm1268_vm8 = vcmask 257216  }
  0xd9   : > { %s2111_s9 = smov 16   ;;  %s2706_s27 = sld [smem:[#allocation24_spill]] }
  0xda   : > { %v1530_v19 = vld [vmem:[%s2703_s21] ss:$0 sm:$0xff]  ;;  %s2112_s14 = smov 24   ;;  %s2707_s23 = sld [smem:[#allocation36_spill]] }
  0xdb   : > { %s2708_s25 = sld [smem:[#allocation29_spill]]  ;;  %s533_s22 = scalar_lea.vmem [#allocation17], %s2437_s7 }
  0xdc   : > { %v1538_v29 = vld [vmem:[%s2704_s10] ss:$0 sm:$0xff]  ;;  %s1357_s17 = sshll.u32 %s533_s22, 4  ;;  %s1343_s13 = scalar_lea.sflag [#allocation8], %s2434_s3  ;;  %s2577_s17 = int_to_ptr.vmem [resolvable:$true] %s1357_s17 }
  0xdd   : > { %s2001_s7 = scalar_lea.vmem %s2577_s17, 128  ;;  %s2113_s10 = smov [#allocation17]  }
  0xde   : > { %1604 = vmatpush3.bf16.xpose.msra.mxu0 %v572_v6  ;;  %1612 = vmatpush3.bf16.xpose.msra.mxu1 %v642_v16  ;;  %v1534_v41 = vld [vmem:[%s2705_s15] ss:$0 sm:$0xff]  ;;  %p2002_p4 = scmp.ne.s32.totalorder %s2577_s17, %s2001_s7 }
  0xdf   : > { %1617 = vmatprep.subr.bf16.mxu0 %v2105_v0  ;;  %1625 = vmatprep.subr.bf16.mxu1 %v2105_v0  ;;  %s1567_s30 = sshll.u32 %s2706_s27, 7 }
  0xe1   : > { %p2710_p7 = scmp.ne.s32.totalorder %s2708_s25, 0 }
  0xe3   : > { %p2003_p3 = pnand %p2002_p4, %p2710_p7 }
  0xe5   : > { %1606 = vmatmul.mubr.msk.bf16.vlgmr.msra.gmra.mrb[0].mxu0 %vm564_vm1, %v540_v9  ;;  %1614 = vmatmul.mubr.msk.bf16.vlgmr.msra.gmra.mrb[0].mxu1 %vm564_vm1, %v542_v18  ;;  %p2004_p1 = pneg %p2003_p3 }
  0xe6   : > { %1618 = vmatpush3.bf16.xpose.msra.mxu0 %v717_v10  ;;  %1621 = vmatprep.mubr.msk.bf16.mxu0 %vm2106_vm0, %v2105_v0 }
  0xe7   : > { %1619 = vmatprep.subr.bf16.mxu0 %v2105_v0  ;;  %1627 = vmatprep.mubr.msk.bf16.mxu1 %vm2106_vm0, %v2105_v0 }
  0xee   : > { %1620 = vmatpush3.bf16.xpose.msra.mxu0 %v720_v12 }
  0xef   : > { %1649 = vmatprep.subr.bf16.mxu0 %v2105_v0 }
  0xf5   : > { %1622 = vmatmul.mubr.msk.bf16.vlgmr.msra.gmra.mrb[4].mxu0 %vm564_vm1, %v690_v14 }
  0xf6   : > { %1651 = vmatprep.mubr.msk.bf16.mxu0 %vm2106_vm0, %v2105_v0 }
 0x1b8   : > { %v608_v20 = vpop.f32.mrb[0].mxu0  ;;  %v678_v42 = vpop.f32.mrb[0].mxu1 }
 0x1b9   : > { %v609_v21 = vadd.f32 %v1530_v19, %v608_v20  ;;  %v1607_v22 = vpop.f32.mrb[1].mxu0  ;;  %v679_v43 = vadd.f32 %v1534_v41, %v678_v42  ;;  %v1615_v44 = vpop.f32.mrb[1].mxu1 }
 0x1ba   : > { %v611_v23 = vpop.f32.mrb[2].mxu0  ;;  %v681_v45 = vpop.f32.mrb[2].mxu1 }
 0x1bb   : > { %v684_v24 = vpack.c.bf16 %v609_v21, %v609_v21  ;;  %v1608_v25 = vpop.f32.mrb[3].mxu0  ;;  %v687_v46 = vpack.c.bf16 %v679_v43, %v679_v43  ;;  %v1616_v47 = vpop.f32.mrb[3].mxu1 }
 0x1bd   : > { %686 = vst.msk [vmem:[#allocation3] sm:$0xf] %vm685_vm2, %v684_v24  ;;  %688 = vst.msk [vmem:[#allocation4] sm:$0xf] %vm685_vm2, %v687_v46 }
 0x1c4   : > { %v766_v26 = vld [vmem:[#allocation3] sm:$0xf]  ;;  %v767_v48 = vld [vmem:[#allocation4] sm:$0xf] }
 0x1c5   : > { %v1800_v27 = vld [vmem:[#allocation3] ss:$0 sps:$4 sm:$0xff]   ;;  %v773_v28 = vsel %vm768_vm3, %v766_v26, 0  ;;  %v832_v49 = vsel %vm830_vm4, %v767_v48, 0  ;;  %v1806_v46 = vld [vmem:[#allocation4] ss:$0 sps:$4 sm:$0xff]  }
 0x1c6   : > { %1626 = vmatpush3.bf16.xpose.msra.mxu1 %v773_v28  ;;  %888 = vrot.lane.b32.xlu1 %v1800_v27, %s2107_s16  ;;  %v1803_v39 = vld [vmem:[#allocation3] ss:$0 sps:$4 sm:$0xff]   ;;  %v1807_v47 = vld [vmem:[#allocation4] ss:$0 sps:$4 sm:$0xff]  }
 0x1c7   : > { %1631 = vmatprep.subr.bf16.mxu1 %v2105_v0  ;;  %v1805_v60 = vld [vmem:[#allocation3] ss:$0 sps:$4 sm:$0xff]   ;;  %v1808_v48 = vld [vmem:[#allocation4] ss:$0 sps:$4 sm:$0xff]  }
 0x1c8   : > { %v756_v30 = vpop.f32.mrb[4].mxu0 }
 0x1c9   : > { %v757_v31 = vadd.f32 %v1538_v29, %v756_v30  ;;  %v1623_v32 = vpop.f32.mrb[5].mxu0 }
 0x1ca   : > { %v759_v33 = vpop.f32.mrb[6].mxu0 }
 0x1cb   : > { %v762_v34 = vpack.c.bf16 %v757_v31, %v757_v31  ;;  %v1624_v35 = vpop.f32.mrb[7].mxu0 }
 0x1cd   : > { %764 = vst.msk [vmem:[#allocation2] sm:$0xf] %vm685_vm2, %v762_v34 }
 0x1d4   : > { %v765_v36 = vld [vmem:[#allocation2] sm:$0xf] }
 0x1d5   : > { %v1801_v37 = vld [vmem:[#allocation2] ss:$0 sps:$4 sm:$0xff]   ;;  %1628 = vmatmul.mubr.msk.bf16.vlgmr.msra.gmra.mrb[4].mxu1 %vm768_vm3, %v765_v36 }
 0x1d6   : > { %883 = vrot.lane.b32.xlu1 %v1801_v37, %s2107_s16  ;;  %1633 = vmatprep.mubr.msk.bf16.mxu1 %vm2106_vm0, %v2105_v0  ;;  %v1802_v38 = vld [vmem:[#allocation2] ss:$0 sps:$4 sm:$0xff]  }
 0x1d7   : > { %v1804_v40 = vld [vmem:[#allocation2] ss:$0 sps:$4 sm:$0xff]   ;;  %1632 = vmatpush3.bf16.msra.mxu1 %v832_v49 }
 0x1d8   : > { %1637 = vmatprep.subr.bf16.mxu1 %v2105_v0 }
 0x1da   : > { %1014 = vrot.lane.b32.xlu1 %v1802_v38, %s2108_s12 }
 0x1de   : > { %1150 = vrot.lane.b32.xlu1 %v1803_v39, %s2109_s29 }
 0x1e2   : > { %1145 = vrot.lane.b32.xlu1 %v1804_v40, %s2109_s29 }
 0x238   : > { %v889_v61 = vpop.permute.xlu1 %888 }
 0x239   : > { %v894_v9 = vsel %vm768_vm3, %v889_v61, 0 }
 0x248   : > { %v884_v62 = vpop.permute.xlu1 %883 }
 0x24c   : > { %v1015_v1 = vpop.permute.xlu1 %1014 }
 0x250   : > { %v1151_v4 = vpop.permute.xlu1 %1150 }
 0x251   : > { %v1156_v7 = vsel %vm768_vm3, %v1151_v4, 0  ;;  %v1809_v4 = vld [vmem:[#allocation15] sm:$0xff]  }
 0x254   : > { %v1146_v10 = vpop.permute.xlu1 %1145 }
 0x2a8   : > { %v809_v50 = vpop.f32.mrb[4].mxu1 }
 0x2a9   : > { %v1629_v51 = vpop.f32.mrb[5].mxu1  ;;  %v815_v52 = vsel %vm768_vm3, %v809_v50, -inf }
 0x2aa   : > { %816 = vmax.xlane.f32.xlu0 %v815_v52  ;;  %v812_v53 = vpop.f32.mrb[6].mxu1 }
 0x2ab   : > { %v1630_v54 = vpop.f32.mrb[7].mxu1 }
 0x337   : > { %v817_v55 = vpop.xlane.xlu0 %816 }
 0x338   : > { %v818_v56 = vsub.f32 %v809_v50, %v817_v55 }
 0x33a   : > { %v819_v57 = vmul.f32 1.442695, %v818_v56 }
 0x33c   : > { %1811 = vpow2.f32 %v819_v57 }
 0x346   : > { %v1812_v58 = vpop.eup %1811 }
 0x347   : > { %v821_v59 = vsel %vm768_vm3, %v1812_v58, 0.0 }
 0x348   : > { %822 = vadd.xlane.f32.xlu0 %v821_v59 }
 0x35e   : > { %1019 = vrot.lane.b32.xlu0 %v1805_v60, %s2108_s12 }
 0x3d5   : > { %v823_v63 = vpop.xlane.xlu0 %822 }
 0x3d6   : > { %1813 = vrcp.f32 %v823_v63 }
 0x3d9   : > { %v1020_v2 = vpop.permute.xlu0 %1019 }
 0x3da   : > { %v1025_v3 = vsel %vm768_vm3, %v1020_v2, 0 }
 0x3db   : > { %1650 = vmatpush3.bf16.xpose.msra.mxu0 %v1025_v3 }
 0x3dc   : > { %1661 = vmatprep.subr.bf16.mxu0 %v2105_v0 }
 0x3e0   : > { %v1814_v5 = vpop.eup %1813 }
 0x3e1   : > { %v825_v6 = vmul.f32 %v1814_v5, %v1812_v58 }
 0x3e2   : > { %1652 = vmatmul.mubr.msk.bf16.vlgmr.msra.gmra.mrb[8].mxu0 %vm768_vm3, %v1015_v1 }
 0x3e3   : > { %1662 = vmatpush3.bf16.xpose.msra.mxu0 %v1156_v7  ;;  %v826_v8 = vpack.c.bf16 %v825_v6, %v825_v6  ;;  %1663 = vmatprep.mubr.msk.bf16.mxu0 %vm2106_vm0, %v2105_v0  ;;  %v1296_v6 = vsel %vm564_vm1, %v1809_v4, 0 }
 0x3e4   : > { %1673 = vmatprep.subr.bf16.mxu0 %v2105_v0 }
 0x3e5   : > { %1634 = vmatmul.mubr.msk.bf16.vlgmr.msra.gmra.mrb[8].mxu1 %vm768_vm3, %v826_v8 }
 0x3e6   : > { %1638 = vmatpush3.bf16.xpose.msra.mxu1 %v894_v9  ;;  %1639 = vmatprep.mubr.msk.bf16.mxu1 %vm2106_vm0, %v2105_v0 }
 0x3e7   : > { %1643 = vmatprep.subr.bf16.mxu1 %v2105_v0 }
 0x3ea   : > { %1664 = vmatmul.mubr.msk.bf16.vlgmr.msra.gmra.mrb[12].mxu0 %vm768_vm3, %v1146_v10 }
 0x3eb   : > { %1677 = vmatprep.mubr.msk.bf16.mxu0 %vm2106_vm0, %v2105_v0  ;;  %1674 = vmatpush3.bf16.xpose.msra.mxu0 %v1296_v6 }
 0x3ec   : > { %1675 = vmatprep.subr.bf16.mxu0 %v2105_v0 }
 0x3ed   : > { %1640 = vmatmul.mubr.msk.bf16.vlgmr.msra.gmra.mrb[12].mxu1 %vm768_vm3, %v884_v62 }
 0x3ee   : > { %1645 = vmatprep.mubr.msk.bf16.mxu1 %vm2106_vm0, %v2105_v0 }
 0x4b5   : > { %v1061_v11 = vpop.f32.mrb[8].mxu0 }
 0x4b6   : > { %v1653_v12 = vpop.f32.mrb[9].mxu0  ;;  %v1067_v13 = vsel %vm768_vm3, %v1061_v11, -inf }
 0x4b7   : > { %1068 = vmax.xlane.f32.xlu0 %v1067_v13  ;;  %v1064_v14 = vpop.f32.mrb[10].mxu0 }
 0x4b8   : > { %v868_v15 = vpop.f32.mrb[8].mxu1  ;;  %v1654_v16 = vpop.f32.mrb[11].mxu0 }
 0x4b9   : > { %v874_v17 = vpack.c.bf16 %v868_v15, %v868_v15  ;;  %v1635_v18 = vpop.f32.mrb[9].mxu1 }
 0x4ba   : > { %v871_v19 = vpop.f32.mrb[10].mxu1 }
 0x4bb   : > { %876 = vst.msk [vmem:[#allocation5] sm:$0xf] %vm875_vm5, %v874_v17  ;;  %v1636_v20 = vpop.f32.mrb[11].mxu1 }
 0x4bd   : > { %v1192_v21 = vpop.f32.mrb[12].mxu0 }
 0x4be   : > { %v1665_v22 = vpop.f32.mrb[13].mxu0  ;;  %v1198_v30 = vsel %vm768_vm3, %v1192_v21, -inf }
 0x4bf   : > { %v1195_v23 = vpop.f32.mrb[14].mxu0 }
 0x4c0   : > { %v930_v24 = vpop.f32.mrb[12].mxu1  ;;  %v1666_v25 = vpop.f32.mrb[15].mxu0 }
 0x4c1   : > { %v1641_v26 = vpop.f32.mrb[13].mxu1  ;;  %v936_v27 = vsel %vm768_vm3, %v930_v24, -inf }
 0x4c2   : > { %937 = vmax.xlane.f32.xlu1 %v936_v27  ;;  %v933_v28 = vpop.f32.mrb[14].mxu1  ;;  %v1562_v26 = vld [vmem:[%s2707_s23] ss:$0 sm:$0xff] }
 0x4c3   : > { %v1642_v29 = vpop.f32.mrb[15].mxu1 }
 0x4c6   : > { %1199 = vmax.xlane.f32.xlu1 %v1198_v30 }
 0x544   : > { %v1069_v31 = vpop.xlane.xlu0 %1068 }
 0x545   : > { %v1070_v32 = vsub.f32 %v1061_v11, %v1069_v31  ;;  %v1810_v11 = vld [vmem:[#allocation15 + $0x8] sm:$0xff]  }
 0x546   : > { %v1299_v13 = vsel %vm564_vm1, %v1810_v11, 0 }
 0x547   : > { %v1071_v33 = vmul.f32 1.442695, %v1070_v32  ;;  %1676 = vmatpush3.bf16.xpose.msra.mxu0 %v1299_v13 }
 0x549   : > { %1815 = vpow2.f32 %v1071_v33 }
 0x54f   : > { %v938_v34 = vpop.xlane.xlu1 %937 }
 0x550   : > { %v939_v35 = vsub.f32 %v930_v24, %v938_v34 }
 0x552   : > { %v940_v40 = vmul.f32 1.442695, %v939_v35 }
 0x553   : > { %v1816_v36 = vpop.eup %1815  ;;  %v1200_v37 = vpop.xlane.xlu1 %1199 }
 0x554   : > { %v1201_v38 = vsub.f32 %v1192_v21, %v1200_v37  ;;  %v1073_v39 = vsel %vm768_vm3, %v1816_v36, 0.0 }
 0x555   : > { %1074 = vadd.xlane.f32.xlu0 %v1073_v39 }
 0x556   : > { %v1202_v41 = vmul.f32 1.442695, %v1201_v38 }
 0x558   : > { %1817 = vpow2.f32 %v1202_v41 }
 0x559   : > { %1819 = vpow2.f32 %v940_v40 }
 0x562   : > { %v1818_v42 = vpop.eup %1817 }
 0x563   : > { %v1204_v43 = vsel %vm768_vm3, %v1818_v42, 0.0  ;;  %v1820_v44 = vpop.eup %1819 }
 0x564   : > { %1205 = vadd.xlane.f32.xlu1 %v1204_v43  ;;  %v942_v45 = vsel %vm768_vm3, %v1820_v44, 0.0 }
 0x568   : > { %943 = vadd.xlane.f32.xlu1 %v942_v45 }
 0x56b   : > { %951 = vrot.lane.b32.xlu0 %v1806_v46, %s2107_s16  ;;  %s2709_s16 = sld [smem:[#allocation37_spill]] }
 0x571   : > { %s2575_s11 = scalar_lea.hbm %s2709_s16, %s1567_s30 }
 0x579   : > { %1082 = vrot.lane.b32.xlu1 %v1807_v47, %s2108_s12  ;;  %s2005_s12 = sshll.u32 %s2113_s10, 4  ;;  %s2006_s12 = int_to_ptr.vmem [resolvable:$false] %s2005_s12 }
 0x57a   : > { %p2008_p13 = scmp.lt.s32.totalorder %s2577_s17, %s2006_s12 }
 0x57d   : > { %1213 = vrot.lane.b32.xlu1 %v1808_v48, %s2109_s29  ;;  %s2007_s29 = scalar_lea.vmem %s2006_s12, 256 }
 0x57e   : > { %p2009_p6 = scmp.lt.s32.totalorder %s2007_s29, %s2001_s7 }
 0x580   : > { %p2010_p0 = por %p2009_p6, %p2008_p13 }
 0x582   : > { %p2011_p12 = pnand %p2010_p0, %p2004_p1 }
 0x5e2   : > { %v1075_v49 = vpop.xlane.xlu0 %1074 }
 0x5e6   : > { %v952_v50 = vpop.permute.xlu0 %951 }
 0x5e7   : > { %v957_v51 = vsel %vm830_vm4, %v952_v50, 0 }
 0x5e8   : > { %1644 = vmatpush3.bf16.msra.mxu1 %v957_v51 }
 0x5e9   : > { %1655 = vmatprep.subr.bf16.mxu1 %v2105_v0 }
 0x5f1   : > { %v1206_v52 = vpop.xlane.xlu1 %1205 }
 0x5f5   : > { %v944_v53 = vpop.xlane.xlu1 %943 }
 0x5f6   : > { %1821 = vrcp.f32 %v944_v53 }
 0x5f7   : > { %1823 = vrcp.f32 %v1075_v49 }
 0x5f8   : > { %1825 = vrcp.f32 %v1206_v52 }
 0x5f9   : > { %v1083_v56 = vpop.permute.xlu1 %1082 }
 0x5fa   : > { %v1088_v59 = vsel %vm830_vm4, %v1083_v56, 0 }
 0x5fd   : > { %v1214_v61 = vpop.permute.xlu1 %1213 }
 0x5fe   : > { %v1219_v1 = vsel %vm830_vm4, %v1214_v61, 0 }
 0x600   : > { %v1822_v54 = vpop.eup %1821 }
 0x601   : > { %v946_v55 = vmul.f32 %v1822_v54, %v1820_v44  ;;  %v1824_v58 = vpop.eup %1823 }
 0x602   : > { %v1077_v60 = vmul.f32 %v1824_v58, %v1816_v36  ;;  %v1826_v63 = vpop.eup %1825 }
 0x603   : > { %v947_v57 = vpack.c.bf16 %v946_v55, %v946_v55  ;;  %v1208_v2 = vmul.f32 %v1826_v63, %v1818_v42 }
 0x604   : > { %v1078_v62 = vpack.c.bf16 %v1077_v60, %v1077_v60 }
 0x605   : > { %1646 = vmatmul.mubr.msk.bf16.vlgmr.msra.gmra.mrb[16].mxu1 %vm768_vm3, %v947_v57  ;;  %v1209_v3 = vpack.c.bf16 %v1208_v2, %v1208_v2 }
 0x606   : > { %1656 = vmatpush3.bf16.msra.mxu1 %v1088_v59  ;;  %1657 = vmatprep.mubr.msk.bf16.mxu1 %vm2106_vm0, %v2105_v0 }
 0x607   : > { %1667 = vmatprep.subr.bf16.mxu1 %v2105_v0 }
 0x60d   : > { %1658 = vmatmul.mubr.msk.bf16.vlgmr.msra.gmra.mrb[20].mxu1 %vm768_vm3, %v1078_v62 }
 0x60e   : > { %1668 = vmatpush3.bf16.msra.mxu1 %v1219_v1  ;;  %1669 = vmatprep.mubr.msk.bf16.mxu1 %vm2106_vm0, %v2105_v0 }
 0x615   : > { %1670 = vmatmul.mubr.msk.bf16.vlgmr.msra.gmra.mrb[24].mxu1 %vm768_vm3, %v1209_v3 }
 0x6d8   : > { %v993_v5 = vpop.f32.mrb[16].mxu1 }
 0x6d9   : > { %v1570_v7 = vpack.c.bf16 %v993_v5, %v993_v5  ;;  %v1647_v8 = vpop.f32.mrb[17].mxu1 }
 0x6da   : > { %v996_v9 = vpop.f32.mrb[18].mxu1 }
 0x6db   : > { %1003 = vrot.lane.b32.xlu0 %v1570_v7, %s2110_s8  ;;  %v1648_v10 = vpop.f32.mrb[19].mxu1 }
 0x6e0   : > { %v1124_v12 = vpop.f32.mrb[20].mxu1 }
 0x6e1   : > { %v1571_v14 = vpack.c.bf16 %v1124_v12, %v1124_v12  ;;  %v1659_v15 = vpop.f32.mrb[21].mxu1 }
 0x6e2   : > { %v1127_v16 = vpop.f32.mrb[22].mxu1 }
 0x6e3   : > { %1134 = vrot.lane.b32.xlu1 %v1571_v14, %s2111_s9  ;;  %v1660_v17 = vpop.f32.mrb[23].mxu1 }
 0x6e8   : > { %v1255_v18 = vpop.f32.mrb[24].mxu1 }
 0x6e9   : > { %v1572_v19 = vpack.c.bf16 %v1255_v18, %v1255_v18  ;;  %v1671_v20 = vpop.f32.mrb[25].mxu1 }
 0x6ea   : > { %v1258_v21 = vpop.f32.mrb[26].mxu1 }
 0x6eb   : > { %1265 = vrot.lane.b32.xlu0 %v1572_v19, %s2112_s14  ;;  %v1672_v0 = vpop.f32.mrb[27].mxu1 }
 0x74d   : > { %v1004_v22 = vpop.permute.xlu0 %1003 }
 0x74e   : > { %1007 = vst.msk [vmem:[#allocation5] sm:$0xf] %vm1006_vm6, %v1004_v22 }
 0x755   : > { %v1135_v23 = vpop.permute.xlu1 %1134 }
 0x756   : > { %1138 = vst.msk [vmem:[#allocation5] sm:$0xf] %vm1137_vm7, %v1135_v23 }
 0x75d   : > { %v1266_v24 = vpop.permute.xlu0 %1265 }
 0x75e   : > { %1269 = vst.msk [vmem:[#allocation5] sm:$0xf] %vm1268_vm8, %v1266_v24 }
 0x765   : > { %v1270_v25 = vld [vmem:[#allocation5] sm:$0xf] }
 0x766   : > { %1678 = vmatmul.mubr.msk.bf16.vlgmr.msra.gmra.mrb[16].mxu0 %vm564_vm1, %v1270_v25 }
 0x839   : > { %v1335_v27 = vpop.f32.mrb[16].mxu0 }
 0x83a   : > { %v1336_v28 = vadd.f32 %v1562_v26, %v1335_v27  ;;  %v1679_v29 = vpop.f32.mrb[17].mxu0 }
 0x83b   : > { %v1338_v30 = vpop.f32.mrb[18].mxu0 }
 0x83c   : > { %v1680_v31 = vpop.f32.mrb[19].mxu0  ;;  %1341 = vst.msk [vmem:[%s533_s22] sm:$0xff] %vm564_vm1, %v1336_v28 }
 0x83d   : > { %2014 = shalt.err (!%p2011_p12)
}
 0x83e   : > { %s2015_s3 = scalar_lea.hbm %s2575_s11, 128  ;;  %s2019_s15 = scalar_lea.hbm %s2709_s16, 256 }
 0x83f   : > { %p2016_p8 = scmp.ne.s32.totalorder %s2575_s11, %s2015_s3  ;;  %p2020_p5 = scmp.lt.u32.totalorder %s2575_s11, %s2709_s16 }
 0x840   : > { %p2021_p9 = scmp.lt.u32.totalorder %s2019_s15, %s2015_s3  ;;  %p2023_p4 = scmp.lt.u32.totalorder %s2015_s3, %s2575_s11 }
 0x841   : > { %p2017_p11 = pnand %p2016_p8, %p2710_p7 }
 0x842   : > { %p2022_p2 = por %p2021_p9, %p2020_p5 }
 0x843   : > { %p2018_p10 = pneg %p2017_p11 }
 0x844   : > { %p2024_p3 = por %p2023_p4, %p2022_p2 }
 0x846   : > { %p2025_p1 = pnand %p2024_p3, %p2018_p10 }
 0x848   : > { %2028 = shalt.err (!%p2025_p1)
}
 0x849   : > { %1699 = dma.vmem_to_hbm [thread:$0]  (%p2710_p7), %s2577_s17, 128, %s2575_s11, %s1343_s13  }
 0x84a PF: > { %s2711_s27 = sld [smem:[#allocation23_spill]]  ;;  %s2712_s14 = sld [smem:[#allocation27_spill]] }
 0x84b   : > { %s2713_s24 = sld [smem:[#allocation26_spill]] }
 0x850   : > { %s1369_s28 = sand.u32 1, %s2711_s27   ;;  %p2714_p13 = scmp.ne.s32.totalorder %s2712_s14, 0 }
 0x851   : > { %p2715_p6 = scmp.ge.s32.totalorder %s2713_s24, 2  ;;  %s1370_s23 = scalar_lea.sflag [#allocation8], %s1369_s28 }
 0x853   : > { %p1722_p0 = pnand %p2715_p6, %p2714_p13 }
 0x855   : > { %2070 = dma.done.wait (!%p1722_p0), %s1370_s23, 128  }
 0x856   : > { %2072 = vsyncadd (!%p1722_p0), %s1370_s23, 4294967168  ;;  %s32_s22 = sadd.s32 1, %s2713_s24   ;;  %s2716_s25 = sld [smem:[#allocation30_spill]] }
 0x857   : > { %p29_p12 = scmp.ge.s32.totalorder %s32_s22, 4   ;;  %s2717_s20 = sld [smem:[#allocation25_spill]] }
 0x858   : > { %s2718_s21 = sld [smem:[#allocation28_spill]]  ;;  %s2719_s17 = smov %s2079_s18 }
 0x859   : > { %s2720_s18 = smov %s2083_s19  ;;  %31 = sbr.rel (!%p29_p12) target bundleno = 18 (0x12), region = 149 }
 0x85c   : > { %s2721_s19 = smov %s2716_s25 }
 0x860   :  { %1375 = vsyncpa [#allocation7], 1 }
 0x861   :  { %1377 = vsyncpa [#allocation7 + $0x1], 1 }
 0x862   :  { %1378 = vsyncpa [#allocation10], 1 }
 0x863   :  { %1380 = vsyncpa [#allocation10 + $0x1], 1 }
 0x864   :  { %1381 = vsyncpa [#allocation13], 1 }
 0x865   :  { %1382 = vsyncpa [#allocation16], 1 }
 0x866   :  { %1383 = vsyncpa [#allocation8], 1 }
 0x867   :  { %1385 = vsyncpa [#allocation8 + $0x1], 1 }

</bundles_post_ra>
